<compile_context>
chip_gen: v6e
topology: v6e:2x2x1
jax: 0.10.0
libtpu: 0.0.40
codegen_flags: <defaults>
</compile_context>

<pallas_src>
import numpy as np
import jax
import jax.numpy as jnp
from jax.experimental import pallas as pl
from jax.experimental.pallas import tpu as pltpu

# ----------------------------- model hyper-params -----------------------------
NUM_NODES = 16
RNN_UNITS = 32
OUTPUT_DIM = 1          # decoder input_dim == output_dim (module default)
NUM_RNN_LAYERS = 2
MAX_DIFFUSION_STEP = 2
NUM_SUPPORTS = 1        # filter_type = 'laplacian'
NUM_MATRICES = NUM_SUPPORTS * MAX_DIFFUSION_STEP + 1
BATCH = 2
BN = BATCH * NUM_NODES  # rows of every in-kernel tile

_VMEM = pl.BlockSpec(memory_space=pltpu.MemorySpace.VMEM)


# ------------------------------ fused Pallas kernel ------------------------------
def _fused_decoder_kernel(
        s_ref, inp_ref, hx_ref,
        wx0_ref, whg0_ref, whc0_ref, b0_ref,
        wx1_ref, whg1_ref, whc1_ref, b1_ref,
        pwt_ref, pb_ref,
        out_ref, hid_ref):
    s = s_ref[...]                                   # (BN, BN) block-diag support
    U = RNN_UNITS

    def diffuse(x):
        """Chebyshev diffusion stack [T_0 x, T_1 x, ..., T_K x] on the (BN, F) tile."""
        x0 = x
        x1 = jnp.dot(s, x0, preferred_element_type=jnp.float32)
        outs = [x0, x1]
        for _ in range(2, MAX_DIFFUSION_STEP + 1):
            x2 = 2.0 * jnp.dot(s, x1, preferred_element_type=jnp.float32) - x0
            outs.append(x2)
            x1, x0 = x2, x1
        return outs

    def apply_w(xk, wk):
        # xk: (BN, d); wk: (d, out).  d == 1 (layer-0 input part) is a rank-1
        # outer product -> VPU instead of a degenerate K=1 MXU matmul.
        if xk.shape[1] == 1:
            return xk * wk
        return jnp.dot(xk, wk, preferred_element_type=jnp.float32)

    def cell(x_in, hx, wx_ref, whg_ref, whc_ref, b_ref):
        x_diff = diffuse(x_in)                        # shared by gate & candidate
        h_diff = diffuse(hx)
        b = b_ref[...]                                # (1, 3U) = [b_gate | b_cand]

        # Shared x-path: one matmul per diffusion step against [W_gate_x | W_cand_x]
        xc = apply_w(x_diff[0], wx_ref[0])            # (BN, 3U)
        for k in range(1, NUM_MATRICES):
            xc = xc + apply_w(x_diff[k], wx_ref[k])

        # Gate gconv: bias + x contribution + hidden contribution
        gate_acc = b[:, :2 * U] + xc[:, :2 * U]
        for k in range(NUM_MATRICES):
            gate_acc = gate_acc + jnp.dot(h_diff[k], whg_ref[k],
                                          preferred_element_type=jnp.float32)
        gates = jax.nn.sigmoid(gate_acc)
        r = gates[:, :U]
        u = gates[:, U:]

        # Candidate gconv: bias + (shared) x contribution + diffused (r*h) contribution
        rh_diff = diffuse(r * hx)
        cand_acc = b[:, 2 * U:] + xc[:, 2 * U:]
        for k in range(NUM_MATRICES):
            cand_acc = cand_acc + jnp.dot(rh_diff[k], whc_ref[k],
                                          preferred_element_type=jnp.float32)
        c = jnp.tanh(cand_acc)
        return u * hx + (1.0 - u) * c

    h0 = cell(inp_ref[...], hx_ref[0], wx0_ref, whg0_ref, whc0_ref, b0_ref)
    h1 = cell(h0, hx_ref[1], wx1_ref, whg1_ref, whc1_ref, b1_ref)

    hid_ref[0] = h0
    hid_ref[1] = h1

    # OUTPUT_DIM == 1 projection as a lane reduction (avoids a (32,32)@(32,1) matmul):
    pw_t = pwt_ref[...]                              # (1, RNN_UNITS)
    out_ref[...] = jnp.sum(h1 * pw_t, axis=1, keepdims=True) + pb_ref[...]


def decoder_forward(inputs, hidden_state, support_big, packed):
    """DecoderSigmaModel.forward: inputs (B, N*out_dim), hidden (L, B, N*U)."""
    # Row-major-preserving reshapes into the kernel's (B*N, feature) layout (free).
    inp = inputs.reshape(BN, OUTPUT_DIM)
    hx = hidden_state.reshape(NUM_RNN_LAYERS, BN, RNN_UNITS)
    out_flat, hid = pl.pallas_call(
        _fused_decoder_kernel,
        out_shape=(jax.ShapeDtypeStruct((BN, OUTPUT_DIM), jnp.float32),
                   jax.ShapeDtypeStruct((NUM_RNN_LAYERS, BN, RNN_UNITS), jnp.float32)),
        in_specs=[_VMEM] * (3 + len(packed)),
        out_specs=(_VMEM, _VMEM),
    )(support_big, inp, hx, *packed)
    output = out_flat.reshape(BATCH, NUM_NODES * OUTPUT_DIM)
    new_hidden = hid.reshape(NUM_RNN_LAYERS, BATCH, NUM_NODES * RNN_UNITS)
    return output, new_hidden


# ------------------------------- parameter setup -------------------------------
def scaled_laplacian(adj_mx):
    """Matches libcity utils.calculate_scaled_laplacian (lambda_max=None, undirected)."""
    adj = np.maximum(adj_mx, adj_mx.T)
    d = adj.sum(1)
    d_inv_sqrt = np.zeros_like(d)                     # explicit masked computation
    nz = d > 0
    d_inv_sqrt[nz] = 1.0 / np.sqrt(d[nz])
    lap = np.eye(adj.shape[0]) - (d_inv_sqrt[:, None] * adj) * d_inv_sqrt[None, :]
    lambda_max = float(np.max(np.linalg.eigvalsh(lap)))
    lap = (2.0 / lambda_max) * lap - np.eye(adj.shape[0])
    return lap.astype(np.float32)


def init_params(key):
    """Weights in the exact PyTorch gconv layout: (input_size * NUM_MATRICES, out)."""
    layer_params = []
    for layer in range(NUM_RNN_LAYERS):
        in_dim = OUTPUT_DIM if layer == 0 else RNN_UNITS
        input_size = in_dim + RNN_UNITS
        key, k1, k2 = jax.random.split(key, 3)
        w_gate = 0.1 * jax.random.normal(
            k1, (input_size * NUM_MATRICES, 2 * RNN_UNITS), jnp.float32)
        b_gate = jnp.full((1, 2 * RNN_UNITS), 1.0, jnp.float32)   # bias_start = 1.0
        w_cand = 0.1 * jax.random.normal(
            k2, (input_size * NUM_MATRICES, RNN_UNITS), jnp.float32)
        b_cand = jnp.zeros((1, RNN_UNITS), jnp.float32)
        layer_params.append(dict(in_dim=in_dim, w_gate=w_gate, b_gate=b_gate,
                                 w_cand=w_cand, b_cand=b_cand))
    key, kp = jax.random.split(key)
    proj_w = 0.1 * jax.random.normal(kp, (RNN_UNITS, OUTPUT_DIM), jnp.float32)
    proj_b = jnp.zeros((1, OUTPUT_DIM), jnp.float32)
    return layer_params, proj_w, proj_b, key


def split_gconv_weight(w, d_in):
    """PyTorch gconv weight (in_size*M, out) -> per-diffusion-step input/hidden blocks.

    Row index of the torch weight is feature*M + k with features ordered
    [input part (d_in) | hidden part (RNN_UNITS)], so
      xcat @ W == sum_k x_in_k @ w_x[k] + h_k @ w_h[k].
    Returns w_x (M, d_in, out) and w_h (M, RNN_UNITS, out).
    """
    blocks = jnp.stack([w[k::NUM_MATRICES] for k in range(NUM_MATRICES)])
    return blocks[:, :d_in, :], blocks[:, d_in:, :]


def pack_params(layer_params, proj_w, proj_b):
    """Host-side packing into the kernel operand layout (13 operands total)."""
    packed = []
    for p in layer_params:
        wgx, wgh = split_gconv_weight(p["w_gate"], p["in_dim"])   # (M,d,2U), (M,U,2U)
        wcx, wch = split_gconv_weight(p["w_cand"], p["in_dim"])   # (M,d, U), (M,U, U)
        wx = jnp.concatenate([wgx, wcx], axis=2)                  # (M,d,3U) shared x-path
        bias = jnp.concatenate([p["b_gate"], p["b_cand"]], axis=1)  # (1,3U)
        packed += [wx, wgh, wch, bias]
    packed += [proj_w.T, proj_b]                      # projection weight as (1, U)
    return tuple(packed)


# ----------------------- pure-JAX reference (PyTorch order) -----------------------
def _reference_gconv(inputs, state, support, weight, bias, output_size):
    b, n = inputs.shape[0], NUM_NODES
    x = jnp.concatenate([inputs.reshape(b, n, -1), state.reshape(b, n, -1)], axis=2)
    in_size = x.shape[2]
    x0 = x.transpose(1, 2, 0).reshape(n, in_size * b)
    xs = [x0]
    x1 = support @ x0
    xs.append(x1)
    for _ in range(2, MAX_DIFFUSION_STEP + 1):
        x2 = 2.0 * (support @ x1) - x0
        xs.append(x2)
        x1, x0 = x2, x1
    xcat = jnp.stack(xs, axis=0).reshape(NUM_MATRICES, n, in_size, b)
    xcat = xcat.transpose(3, 1, 2, 0).reshape(b * n, in_size * NUM_MATRICES)
    return (xcat @ weight + bias).reshape(b, n * output_size)


def _reference_forward(inputs, hidden_state, support, layer_params, proj_w, proj_b):
    output, hiddens = inputs, []
    for layer in range(NUM_RNN_LAYERS):
        p, hx = layer_params[layer], hidden_state[layer]
        value = jax.nn.sigmoid(_reference_gconv(
            output, hx, support, p["w_gate"], p["b_gate"], 2 * RNN_UNITS))
        value = value.reshape(-1, NUM_NODES, 2 * RNN_UNITS)
        r = value[:, :, :RNN_UNITS].reshape(-1, NUM_NODES * RNN_UNITS)
        u = value[:, :, RNN_UNITS:].reshape(-1, NUM_NODES * RNN_UNITS)
        c = jnp.tanh(_reference_gconv(
            output, r * hx, support, p["w_cand"], p["b_cand"], RNN_UNITS))
        new_h = u * hx + (1.0 - u) * c
        hiddens.append(new_h)
        output = new_h
    projected = output.reshape(-1, RNN_UNITS) @ proj_w + proj_b
    return projected.reshape(-1, NUM_NODES * OUTPUT_DIM), jnp.stack(hiddens)


# ------------------------------------ main --------------------------------------
if __name__ == "__main__":
    key = jax.random.PRNGKey(0)

    # synthetic adjacency -> scaled-Laplacian support (filter_type='laplacian')
    key, ka = jax.random.split(key)
    adj_np = np.abs(np.asarray(jax.random.normal(ka, (NUM_NODES, NUM_NODES))))
    np.fill_diagonal(adj_np, 0.0)
    support_np = scaled_laplacian(adj_np)
    # block-diagonal (I_B kron S) so diffusion works directly on the (B*N, F) layout
    support_big = jnp.asarray(np.kron(np.eye(BATCH, dtype=np.float32), support_np))
    support = jnp.asarray(support_np)

    layer_params, proj_w, proj_b, key = init_params(key)
    packed = pack_params(layer_params, proj_w, proj_b)

    key, ki, kh = jax.random.split(key, 3)
    inputs = jax.random.normal(ki, (BATCH, NUM_NODES * OUTPUT_DIM), jnp.float32)
    hidden_state = jax.random.normal(
        kh, (NUM_RNN_LAYERS, BATCH, NUM_NODES * RNN_UNITS), jnp.float32)

    fwd = jax.jit(lambda x, h: decoder_forward(x, h, support_big, packed))
    output, new_hidden = fwd(inputs, hidden_state)
    jax.block_until_ready((output, new_hidden))

    assert output.shape == (BATCH, NUM_NODES * OUTPUT_DIM)
    assert new_hidden.shape == (NUM_RNN_LAYERS, BATCH, NUM_NODES * RNN_UNITS)
    assert bool(jnp.all(jnp.isfinite(output))) and bool(jnp.all(jnp.isfinite(new_hidden)))

    # Reference check: verifies the per-diffusion-block weight re-ordering and the
    # merged gate/candidate x-path match the original stack/permute gconv.
    # Tolerance covers MXU vs XLA accumulation order.
    with jax.default_matmul_precision("float32"):
        ref_out, ref_hid = _reference_forward(
            inputs, hidden_state, support, layer_params, proj_w, proj_b)
    np.testing.assert_allclose(np.asarray(output), np.asarray(ref_out),
                               rtol=1e-2, atol=1e-2)
    np.testing.assert_allclose(np.asarray(new_hidden), np.asarray(ref_hid),
                               rtol=1e-2, atol=1e-2)

    print("KERNEL_OK")
</pallas_src>

<mosaic_0001>
module attributes {stable_mosaic.version = 11 : i64} {
  func.func @_fused_decoder_kernel(%arg0: memref<32x32xf32, #tpu.memory_space<vmem>>, %arg1: memref<32x1xf32, #tpu.memory_space<vmem>>, %arg2: memref<2x32x32xf32, #tpu.memory_space<vmem>>, %arg3: memref<3x1x96xf32, #tpu.memory_space<vmem>>, %arg4: memref<3x32x64xf32, #tpu.memory_space<vmem>>, %arg5: memref<3x32x32xf32, #tpu.memory_space<vmem>>, %arg6: memref<1x96xf32, #tpu.memory_space<vmem>>, %arg7: memref<3x32x96xf32, #tpu.memory_space<vmem>>, %arg8: memref<3x32x64xf32, #tpu.memory_space<vmem>>, %arg9: memref<3x32x32xf32, #tpu.memory_space<vmem>>, %arg10: memref<1x96xf32, #tpu.memory_space<vmem>>, %arg11: memref<1x32xf32, #tpu.memory_space<vmem>>, %arg12: memref<1x1xf32, #tpu.memory_space<vmem>>, %arg13: memref<32x1xf32, #tpu.memory_space<vmem>>, %arg14: memref<2x32x32xf32, #tpu.memory_space<vmem>>) attributes {dimension_semantics = [], scalar_prefetch = 0 : i64, scratch_operands = 0 : i64, tpu.core_type = #tpu.core_type<tc>} {
    %c0 = arith.constant 0 : index
    %c0_0 = arith.constant 0 : index
    %0 = vector.load %arg0[%c0, %c0_0] : memref<32x32xf32, #tpu.memory_space<vmem>>, vector<32x32xf32>
    %c0_1 = arith.constant 0 : index
    %c0_2 = arith.constant 0 : index
    %1 = vector.load %arg1[%c0_1, %c0_2] : memref<32x1xf32, #tpu.memory_space<vmem>>, vector<32x1xf32>
    %c0_3 = arith.constant 0 : index
    %c0_4 = arith.constant 0 : index
    %c0_5 = arith.constant 0 : index
    %2 = vector.load %arg2[%c0_3, %c0_4, %c0_5] : memref<2x32x32xf32, #tpu.memory_space<vmem>>, vector<1x32x32xf32>
    %3 = vector.shape_cast %2 : vector<1x32x32xf32> to vector<32x32xf32>
    %cst = arith.constant dense<0.000000e+00> : vector<32x1xf32>
    %4 = tpu.matmul %0, %1, %cst {dimension_numbers = #tpu.dot_dimension_numbers<[1], [0], [0], [1], [0, 0, 1, 1], [], []>} : vector<32x32xf32>, vector<32x1xf32>, vector<32x1xf32> -> vector<32x1xf32>
    %cst_6 = arith.constant dense<0.000000e+00> : vector<32x1xf32>
    %5 = tpu.matmul %0, %4, %cst_6 {dimension_numbers = #tpu.dot_dimension_numbers<[1], [0], [0], [1], [0, 0, 1, 1], [], []>} : vector<32x32xf32>, vector<32x1xf32>, vector<32x1xf32> -> vector<32x1xf32>
    %cst_7 = arith.constant 2.000000e+00 : f32
    %6 = vector.broadcast %cst_7 : f32 to vector<32x1xf32>
    %7 = arith.mulf %6, %5 : vector<32x1xf32>
    %8 = arith.subf %7, %1 : vector<32x1xf32>
    %cst_8 = arith.constant dense<0.000000e+00> : vector<32x32xf32>
    %9 = tpu.matmul %0, %3, %cst_8 {dimension_numbers = #tpu.dot_dimension_numbers<[1], [0], [0], [1], [0, 0, 1, 1], [], []>} : vector<32x32xf32>, vector<32x32xf32>, vector<32x32xf32> -> vector<32x32xf32>
    %cst_9 = arith.constant dense<0.000000e+00> : vector<32x32xf32>
    %10 = tpu.matmul %0, %9, %cst_9 {dimension_numbers = #tpu.dot_dimension_numbers<[1], [0], [0], [1], [0, 0, 1, 1], [], []>} : vector<32x32xf32>, vector<32x32xf32>, vector<32x32xf32> -> vector<32x32xf32>
    %cst_10 = arith.constant 2.000000e+00 : f32
    %11 = vector.broadcast %cst_10 : f32 to vector<32x32xf32>
    %12 = arith.mulf %11, %10 : vector<32x32xf32>
    %13 = arith.subf %12, %3 : vector<32x32xf32>
    %c0_11 = arith.constant 0 : index
    %c0_12 = arith.constant 0 : index
    %14 = vector.load %arg6[%c0_11, %c0_12] : memref<1x96xf32, #tpu.memory_space<vmem>>, vector<1x96xf32>
    %c0_13 = arith.constant 0 : index
    %c0_14 = arith.constant 0 : index
    %c0_15 = arith.constant 0 : index
    %15 = vector.load %arg3[%c0_13, %c0_14, %c0_15] : memref<3x1x96xf32, #tpu.memory_space<vmem>>, vector<1x1x96xf32>
    %16 = vector.shape_cast %15 : vector<1x1x96xf32> to vector<1x96xf32>
    %17 = vector.broadcast %1 : vector<32x1xf32> to vector<32x96xf32>
    %18 = vector.broadcast %16 : vector<1x96xf32> to vector<32x96xf32>
    %19 = arith.mulf %17, %18 : vector<32x96xf32>
    %c1 = arith.constant 1 : index
    %c0_16 = arith.constant 0 : index
    %c0_17 = arith.constant 0 : index
    %20 = vector.load %arg3[%c1, %c0_16, %c0_17] : memref<3x1x96xf32, #tpu.memory_space<vmem>>, vector<1x1x96xf32>
    %21 = vector.shape_cast %20 : vector<1x1x96xf32> to vector<1x96xf32>
    %22 = vector.broadcast %4 : vector<32x1xf32> to vector<32x96xf32>
    %23 = vector.broadcast %21 : vector<1x96xf32> to vector<32x96xf32>
    %24 = arith.mulf %22, %23 : vector<32x96xf32>
    %25 = arith.addf %19, %24 : vector<32x96xf32>
    %c2 = arith.constant 2 : index
    %c0_18 = arith.constant 0 : index
    %c0_19 = arith.constant 0 : index
    %26 = vector.load %arg3[%c2, %c0_18, %c0_19] : memref<3x1x96xf32, #tpu.memory_space<vmem>>, vector<1x1x96xf32>
    %27 = vector.shape_cast %26 : vector<1x1x96xf32> to vector<1x96xf32>
    %28 = vector.broadcast %8 : vector<32x1xf32> to vector<32x96xf32>
    %29 = vector.broadcast %27 : vector<1x96xf32> to vector<32x96xf32>
    %30 = arith.mulf %28, %29 : vector<32x96xf32>
    %31 = arith.addf %25, %30 : vector<32x96xf32>
    %32 = vector.extract_strided_slice %14 {offsets = [0, 0], sizes = [1, 64], strides = [1, 1]} : vector<1x96xf32> to vector<1x64xf32>
    %33 = vector.extract_strided_slice %31 {offsets = [0, 0], sizes = [32, 64], strides = [1, 1]} : vector<32x96xf32> to vector<32x64xf32>
    %34 = vector.broadcast %32 : vector<1x64xf32> to vector<32x64xf32>
    %35 = arith.addf %34, %33 : vector<32x64xf32>
    %c0_20 = arith.constant 0 : index
    %c0_21 = arith.constant 0 : index
    %c0_22 = arith.constant 0 : index
    %36 = vector.load %arg4[%c0_20, %c0_21, %c0_22] : memref<3x32x64xf32, #tpu.memory_space<vmem>>, vector<1x32x64xf32>
    %37 = vector.shape_cast %36 : vector<1x32x64xf32> to vector<32x64xf32>
    %cst_23 = arith.constant dense<0.000000e+00> : vector<32x64xf32>
    %38 = tpu.matmul %3, %37, %cst_23 {dimension_numbers = #tpu.dot_dimension_numbers<[1], [0], [0], [1], [0, 0, 1, 1], [], []>} : vector<32x32xf32>, vector<32x64xf32>, vector<32x64xf32> -> vector<32x64xf32>
    %39 = arith.addf %35, %38 : vector<32x64xf32>
    %c1_24 = arith.constant 1 : index
    %c0_25 = arith.constant 0 : index
    %c0_26 = arith.constant 0 : index
    %40 = vector.load %arg4[%c1_24, %c0_25, %c0_26] : memref<3x32x64xf32, #tpu.memory_space<vmem>>, vector<1x32x64xf32>
    %41 = vector.shape_cast %40 : vector<1x32x64xf32> to vector<32x64xf32>
    %cst_27 = arith.constant dense<0.000000e+00> : vector<32x64xf32>
    %42 = tpu.matmul %9, %41, %cst_27 {dimension_numbers = #tpu.dot_dimension_numbers<[1], [0], [0], [1], [0, 0, 1, 1], [], []>} : vector<32x32xf32>, vector<32x64xf32>, vector<32x64xf32> -> vector<32x64xf32>
    %43 = arith.addf %39, %42 : vector<32x64xf32>
    %c2_28 = arith.constant 2 : index
    %c0_29 = arith.constant 0 : index
    %c0_30 = arith.constant 0 : index
    %44 = vector.load %arg4[%c2_28, %c0_29, %c0_30] : memref<3x32x64xf32, #tpu.memory_space<vmem>>, vector<1x32x64xf32>
    %45 = vector.shape_cast %44 : vector<1x32x64xf32> to vector<32x64xf32>
    %cst_31 = arith.constant dense<0.000000e+00> : vector<32x64xf32>
    %46 = tpu.matmul %13, %45, %cst_31 {dimension_numbers = #tpu.dot_dimension_numbers<[1], [0], [0], [1], [0, 0, 1, 1], [], []>} : vector<32x32xf32>, vector<32x64xf32>, vector<32x64xf32> -> vector<32x64xf32>
    %47 = arith.addf %43, %46 : vector<32x64xf32>
    %48 = arith.negf %47 : vector<32x64xf32>
    %49 = math.exp %48 : vector<32x64xf32>
    %cst_32 = arith.constant 1.000000e+00 : f32
    %50 = vector.broadcast %cst_32 : f32 to vector<32x64xf32>
    %51 = arith.addf %50, %49 : vector<32x64xf32>
    %52 = arith.divf %50, %51 : vector<32x64xf32>
    %53 = vector.extract_strided_slice %52 {offsets = [0, 0], sizes = [32, 32], strides = [1, 1]} : vector<32x64xf32> to vector<32x32xf32>
    %54 = vector.extract_strided_slice %52 {offsets = [0, 32], sizes = [32, 32], strides = [1, 1]} : vector<32x64xf32> to vector<32x32xf32>
    %55 = arith.mulf %53, %3 : vector<32x32xf32>
    %cst_33 = arith.constant dense<0.000000e+00> : vector<32x32xf32>
    %56 = tpu.matmul %0, %55, %cst_33 {dimension_numbers = #tpu.dot_dimension_numbers<[1], [0], [0], [1], [0, 0, 1, 1], [], []>} : vector<32x32xf32>, vector<32x32xf32>, vector<32x32xf32> -> vector<32x32xf32>
    %cst_34 = arith.constant dense<0.000000e+00> : vector<32x32xf32>
    %57 = tpu.matmul %0, %56, %cst_34 {dimension_numbers = #tpu.dot_dimension_numbers<[1], [0], [0], [1], [0, 0, 1, 1], [], []>} : vector<32x32xf32>, vector<32x32xf32>, vector<32x32xf32> -> vector<32x32xf32>
    %cst_35 = arith.constant 2.000000e+00 : f32
    %58 = vector.broadcast %cst_35 : f32 to vector<32x32xf32>
    %59 = arith.mulf %58, %57 : vector<32x32xf32>
    %60 = arith.subf %59, %55 : vector<32x32xf32>
    %61 = vector.extract_strided_slice %14 {offsets = [0, 64], sizes = [1, 32], strides = [1, 1]} : vector<1x96xf32> to vector<1x32xf32>
    %62 = vector.extract_strided_slice %31 {offsets = [0, 64], sizes = [32, 32], strides = [1, 1]} : vector<32x96xf32> to vector<32x32xf32>
    %63 = vector.broadcast %61 : vector<1x32xf32> to vector<32x32xf32>
    %64 = arith.addf %63, %62 : vector<32x32xf32>
    %c0_36 = arith.constant 0 : index
    %c0_37 = arith.constant 0 : index
    %c0_38 = arith.constant 0 : index
    %65 = vector.load %arg5[%c0_36, %c0_37, %c0_38] : memref<3x32x32xf32, #tpu.memory_space<vmem>>, vector<1x32x32xf32>
    %66 = vector.shape_cast %65 : vector<1x32x32xf32> to vector<32x32xf32>
    %cst_39 = arith.constant dense<0.000000e+00> : vector<32x32xf32>
    %67 = tpu.matmul %55, %66, %cst_39 {dimension_numbers = #tpu.dot_dimension_numbers<[1], [0], [0], [1], [0, 0, 1, 1], [], []>} : vector<32x32xf32>, vector<32x32xf32>, vector<32x32xf32> -> vector<32x32xf32>
    %68 = arith.addf %64, %67 : vector<32x32xf32>
    %c1_40 = arith.constant 1 : index
    %c0_41 = arith.constant 0 : index
    %c0_42 = arith.constant 0 : index
    %69 = vector.load %arg5[%c1_40, %c0_41, %c0_42] : memref<3x32x32xf32, #tpu.memory_space<vmem>>, vector<1x32x32xf32>
    %70 = vector.shape_cast %69 : vector<1x32x32xf32> to vector<32x32xf32>
    %cst_43 = arith.constant dense<0.000000e+00> : vector<32x32xf32>
    %71 = tpu.matmul %56, %70, %cst_43 {dimension_numbers = #tpu.dot_dimension_numbers<[1], [0], [0], [1], [0, 0, 1, 1], [], []>} : vector<32x32xf32>, vector<32x32xf32>, vector<32x32xf32> -> vector<32x32xf32>
    %72 = arith.addf %68, %71 : vector<32x32xf32>
    %c2_44 = arith.constant 2 : index
    %c0_45 = arith.constant 0 : index
    %c0_46 = arith.constant 0 : index
    %73 = vector.load %arg5[%c2_44, %c0_45, %c0_46] : memref<3x32x32xf32, #tpu.memory_space<vmem>>, vector<1x32x32xf32>
    %74 = vector.shape_cast %73 : vector<1x32x32xf32> to vector<32x32xf32>
    %cst_47 = arith.constant dense<0.000000e+00> : vector<32x32xf32>
    %75 = tpu.matmul %60, %74, %cst_47 {dimension_numbers = #tpu.dot_dimension_numbers<[1], [0], [0], [1], [0, 0, 1, 1], [], []>} : vector<32x32xf32>, vector<32x32xf32>, vector<32x32xf32> -> vector<32x32xf32>
    %76 = arith.addf %72, %75 : vector<32x32xf32>
    %77 = math.tanh %76 : vector<32x32xf32>
    %78 = arith.mulf %54, %3 : vector<32x32xf32>
    %cst_48 = arith.constant 1.000000e+00 : f32
    %79 = vector.broadcast %cst_48 : f32 to vector<32x32xf32>
    %80 = arith.subf %79, %54 : vector<32x32xf32>
    %81 = arith.mulf %80, %77 : vector<32x32xf32>
    %82 = arith.addf %78, %81 : vector<32x32xf32>
    %c1_49 = arith.constant 1 : index
    %c0_50 = arith.constant 0 : index
    %c0_51 = arith.constant 0 : index
    %83 = vector.load %arg2[%c1_49, %c0_50, %c0_51] : memref<2x32x32xf32, #tpu.memory_space<vmem>>, vector<1x32x32xf32>
    %84 = vector.shape_cast %83 : vector<1x32x32xf32> to vector<32x32xf32>
    %cst_52 = arith.constant dense<0.000000e+00> : vector<32x32xf32>
    %85 = tpu.matmul %0, %82, %cst_52 {dimension_numbers = #tpu.dot_dimension_numbers<[1], [0], [0], [1], [0, 0, 1, 1], [], []>} : vector<32x32xf32>, vector<32x32xf32>, vector<32x32xf32> -> vector<32x32xf32>
    %cst_53 = arith.constant dense<0.000000e+00> : vector<32x32xf32>
    %86 = tpu.matmul %0, %85, %cst_53 {dimension_numbers = #tpu.dot_dimension_numbers<[1], [0], [0], [1], [0, 0, 1, 1], [], []>} : vector<32x32xf32>, vector<32x32xf32>, vector<32x32xf32> -> vector<32x32xf32>
    %cst_54 = arith.constant 2.000000e+00 : f32
    %87 = vector.broadcast %cst_54 : f32 to vector<32x32xf32>
    %88 = arith.mulf %87, %86 : vector<32x32xf32>
    %89 = arith.subf %88, %82 : vector<32x32xf32>
    %cst_55 = arith.constant dense<0.000000e+00> : vector<32x32xf32>
    %90 = tpu.matmul %0, %84, %cst_55 {dimension_numbers = #tpu.dot_dimension_numbers<[1], [0], [0], [1], [0, 0, 1, 1], [], []>} : vector<32x32xf32>, vector<32x32xf32>, vector<32x32xf32> -> vector<32x32xf32>
    %cst_56 = arith.constant dense<0.000000e+00> : vector<32x32xf32>
    %91 = tpu.matmul %0, %90, %cst_56 {dimension_numbers = #tpu.dot_dimension_numbers<[1], [0], [0], [1], [0, 0, 1, 1], [], []>} : vector<32x32xf32>, vector<32x32xf32>, vector<32x32xf32> -> vector<32x32xf32>
    %cst_57 = arith.constant 2.000000e+00 : f32
    %92 = vector.broadcast %cst_57 : f32 to vector<32x32xf32>
    %93 = arith.mulf %92, %91 : vector<32x32xf32>
    %94 = arith.subf %93, %84 : vector<32x32xf32>
    %c0_58 = arith.constant 0 : index
    %c0_59 = arith.constant 0 : index
    %95 = vector.load %arg10[%c0_58, %c0_59] : memref<1x96xf32, #tpu.memory_space<vmem>>, vector<1x96xf32>
    %c0_60 = arith.constant 0 : index
    %c0_61 = arith.constant 0 : index
    %c0_62 = arith.constant 0 : index
    %96 = vector.load %arg7[%c0_60, %c0_61, %c0_62] : memref<3x32x96xf32, #tpu.memory_space<vmem>>, vector<1x32x96xf32>
    %97 = vector.shape_cast %96 : vector<1x32x96xf32> to vector<32x96xf32>
    %cst_63 = arith.constant dense<0.000000e+00> : vector<32x96xf32>
    %98 = tpu.matmul %82, %97, %cst_63 {dimension_numbers = #tpu.dot_dimension_numbers<[1], [0], [0], [1], [0, 0, 1, 1], [], []>} : vector<32x32xf32>, vector<32x96xf32>, vector<32x96xf32> -> vector<32x96xf32>
    %c1_64 = arith.constant 1 : index
    %c0_65 = arith.constant 0 : index
    %c0_66 = arith.constant 0 : index
    %99 = vector.load %arg7[%c1_64, %c0_65, %c0_66] : memref<3x32x96xf32, #tpu.memory_space<vmem>>, vector<1x32x96xf32>
    %100 = vector.shape_cast %99 : vector<1x32x96xf32> to vector<32x96xf32>
    %cst_67 = arith.constant dense<0.000000e+00> : vector<32x96xf32>
    %101 = tpu.matmul %85, %100, %cst_67 {dimension_numbers = #tpu.dot_dimension_numbers<[1], [0], [0], [1], [0, 0, 1, 1], [], []>} : vector<32x32xf32>, vector<32x96xf32>, vector<32x96xf32> -> vector<32x96xf32>
    %102 = arith.addf %98, %101 : vector<32x96xf32>
    %c2_68 = arith.constant 2 : index
    %c0_69 = arith.constant 0 : index
    %c0_70 = arith.constant 0 : index
    %103 = vector.load %arg7[%c2_68, %c0_69, %c0_70] : memref<3x32x96xf32, #tpu.memory_space<vmem>>, vector<1x32x96xf32>
    %104 = vector.shape_cast %103 : vector<1x32x96xf32> to vector<32x96xf32>
    %cst_71 = arith.constant dense<0.000000e+00> : vector<32x96xf32>
    %105 = tpu.matmul %89, %104, %cst_71 {dimension_numbers = #tpu.dot_dimension_numbers<[1], [0], [0], [1], [0, 0, 1, 1], [], []>} : vector<32x32xf32>, vector<32x96xf32>, vector<32x96xf32> -> vector<32x96xf32>
    %106 = arith.addf %102, %105 : vector<32x96xf32>
    %107 = vector.extract_strided_slice %95 {offsets = [0, 0], sizes = [1, 64], strides = [1, 1]} : vector<1x96xf32> to vector<1x64xf32>
    %108 = vector.extract_strided_slice %106 {offsets = [0, 0], sizes = [32, 64], strides = [1, 1]} : vector<32x96xf32> to vector<32x64xf32>
    %109 = vector.broadcast %107 : vector<1x64xf32> to vector<32x64xf32>
    %110 = arith.addf %109, %108 : vector<32x64xf32>
    %c0_72 = arith.constant 0 : index
    %c0_73 = arith.constant 0 : index
    %c0_74 = arith.constant 0 : index
    %111 = vector.load %arg8[%c0_72, %c0_73, %c0_74] : memref<3x32x64xf32, #tpu.memory_space<vmem>>, vector<1x32x64xf32>
    %112 = vector.shape_cast %111 : vector<1x32x64xf32> to vector<32x64xf32>
    %cst_75 = arith.constant dense<0.000000e+00> : vector<32x64xf32>
    %113 = tpu.matmul %84, %112, %cst_75 {dimension_numbers = #tpu.dot_dimension_numbers<[1], [0], [0], [1], [0, 0, 1, 1], [], []>} : vector<32x32xf32>, vector<32x64xf32>, vector<32x64xf32> -> vector<32x64xf32>
    %114 = arith.addf %110, %113 : vector<32x64xf32>
    %c1_76 = arith.constant 1 : index
    %c0_77 = arith.constant 0 : index
    %c0_78 = arith.constant 0 : index
    %115 = vector.load %arg8[%c1_76, %c0_77, %c0_78] : memref<3x32x64xf32, #tpu.memory_space<vmem>>, vector<1x32x64xf32>
    %116 = vector.shape_cast %115 : vector<1x32x64xf32> to vector<32x64xf32>
    %cst_79 = arith.constant dense<0.000000e+00> : vector<32x64xf32>
    %117 = tpu.matmul %90, %116, %cst_79 {dimension_numbers = #tpu.dot_dimension_numbers<[1], [0], [0], [1], [0, 0, 1, 1], [], []>} : vector<32x32xf32>, vector<32x64xf32>, vector<32x64xf32> -> vector<32x64xf32>
    %118 = arith.addf %114, %117 : vector<32x64xf32>
    %c2_80 = arith.constant 2 : index
    %c0_81 = arith.constant 0 : index
    %c0_82 = arith.constant 0 : index
    %119 = vector.load %arg8[%c2_80, %c0_81, %c0_82] : memref<3x32x64xf32, #tpu.memory_space<vmem>>, vector<1x32x64xf32>
    %120 = vector.shape_cast %119 : vector<1x32x64xf32> to vector<32x64xf32>
    %cst_83 = arith.constant dense<0.000000e+00> : vector<32x64xf32>
    %121 = tpu.matmul %94, %120, %cst_83 {dimension_numbers = #tpu.dot_dimension_numbers<[1], [0], [0], [1], [0, 0, 1, 1], [], []>} : vector<32x32xf32>, vector<32x64xf32>, vector<32x64xf32> -> vector<32x64xf32>
    %122 = arith.addf %118, %121 : vector<32x64xf32>
    %123 = arith.negf %122 : vector<32x64xf32>
    %124 = math.exp %123 : vector<32x64xf32>
    %cst_84 = arith.constant 1.000000e+00 : f32
    %125 = vector.broadcast %cst_84 : f32 to vector<32x64xf32>
    %126 = arith.addf %125, %124 : vector<32x64xf32>
    %127 = arith.divf %125, %126 : vector<32x64xf32>
    %128 = vector.extract_strided_slice %127 {offsets = [0, 0], sizes = [32, 32], strides = [1, 1]} : vector<32x64xf32> to vector<32x32xf32>
    %129 = vector.extract_strided_slice %127 {offsets = [0, 32], sizes = [32, 32], strides = [1, 1]} : vector<32x64xf32> to vector<32x32xf32>
    %130 = arith.mulf %128, %84 : vector<32x32xf32>
    %cst_85 = arith.constant dense<0.000000e+00> : vector<32x32xf32>
    %131 = tpu.matmul %0, %130, %cst_85 {dimension_numbers = #tpu.dot_dimension_numbers<[1], [0], [0], [1], [0, 0, 1, 1], [], []>} : vector<32x32xf32>, vector<32x32xf32>, vector<32x32xf32> -> vector<32x32xf32>
    %cst_86 = arith.constant dense<0.000000e+00> : vector<32x32xf32>
    %132 = tpu.matmul %0, %131, %cst_86 {dimension_numbers = #tpu.dot_dimension_numbers<[1], [0], [0], [1], [0, 0, 1, 1], [], []>} : vector<32x32xf32>, vector<32x32xf32>, vector<32x32xf32> -> vector<32x32xf32>
    %cst_87 = arith.constant 2.000000e+00 : f32
    %133 = vector.broadcast %cst_87 : f32 to vector<32x32xf32>
    %134 = arith.mulf %133, %132 : vector<32x32xf32>
    %135 = arith.subf %134, %130 : vector<32x32xf32>
    %136 = vector.extract_strided_slice %95 {offsets = [0, 64], sizes = [1, 32], strides = [1, 1]} : vector<1x96xf32> to vector<1x32xf32>
    %137 = vector.extract_strided_slice %106 {offsets = [0, 64], sizes = [32, 32], strides = [1, 1]} : vector<32x96xf32> to vector<32x32xf32>
    %138 = vector.broadcast %136 : vector<1x32xf32> to vector<32x32xf32>
    %139 = arith.addf %138, %137 : vector<32x32xf32>
    %c0_88 = arith.constant 0 : index
    %c0_89 = arith.constant 0 : index
    %c0_90 = arith.constant 0 : index
    %140 = vector.load %arg9[%c0_88, %c0_89, %c0_90] : memref<3x32x32xf32, #tpu.memory_space<vmem>>, vector<1x32x32xf32>
    %141 = vector.shape_cast %140 : vector<1x32x32xf32> to vector<32x32xf32>
    %cst_91 = arith.constant dense<0.000000e+00> : vector<32x32xf32>
    %142 = tpu.matmul %130, %141, %cst_91 {dimension_numbers = #tpu.dot_dimension_numbers<[1], [0], [0], [1], [0, 0, 1, 1], [], []>} : vector<32x32xf32>, vector<32x32xf32>, vector<32x32xf32> -> vector<32x32xf32>
    %143 = arith.addf %139, %142 : vector<32x32xf32>
    %c1_92 = arith.constant 1 : index
    %c0_93 = arith.constant 0 : index
    %c0_94 = arith.constant 0 : index
    %144 = vector.load %arg9[%c1_92, %c0_93, %c0_94] : memref<3x32x32xf32, #tpu.memory_space<vmem>>, vector<1x32x32xf32>
    %145 = vector.shape_cast %144 : vector<1x32x32xf32> to vector<32x32xf32>
    %cst_95 = arith.constant dense<0.000000e+00> : vector<32x32xf32>
    %146 = tpu.matmul %131, %145, %cst_95 {dimension_numbers = #tpu.dot_dimension_numbers<[1], [0], [0], [1], [0, 0, 1, 1], [], []>} : vector<32x32xf32>, vector<32x32xf32>, vector<32x32xf32> -> vector<32x32xf32>
    %147 = arith.addf %143, %146 : vector<32x32xf32>
    %c2_96 = arith.constant 2 : index
    %c0_97 = arith.constant 0 : index
    %c0_98 = arith.constant 0 : index
    %148 = vector.load %arg9[%c2_96, %c0_97, %c0_98] : memref<3x32x32xf32, #tpu.memory_space<vmem>>, vector<1x32x32xf32>
    %149 = vector.shape_cast %148 : vector<1x32x32xf32> to vector<32x32xf32>
    %cst_99 = arith.constant dense<0.000000e+00> : vector<32x32xf32>
    %150 = tpu.matmul %135, %149, %cst_99 {dimension_numbers = #tpu.dot_dimension_numbers<[1], [0], [0], [1], [0, 0, 1, 1], [], []>} : vector<32x32xf32>, vector<32x32xf32>, vector<32x32xf32> -> vector<32x32xf32>
    %151 = arith.addf %147, %150 : vector<32x32xf32>
    %152 = math.tanh %151 : vector<32x32xf32>
    %153 = arith.mulf %129, %84 : vector<32x32xf32>
    %cst_100 = arith.constant 1.000000e+00 : f32
    %154 = vector.broadcast %cst_100 : f32 to vector<32x32xf32>
    %155 = arith.subf %154, %129 : vector<32x32xf32>
    %156 = arith.mulf %155, %152 : vector<32x32xf32>
    %157 = arith.addf %153, %156 : vector<32x32xf32>
    %c0_101 = arith.constant 0 : index
    %c0_102 = arith.constant 0 : index
    %c0_103 = arith.constant 0 : index
    %158 = vector.load %arg14[%c0_101, %c0_102, %c0_103] : memref<2x32x32xf32, #tpu.memory_space<vmem>>, vector<1x32x32xf32>
    %159 = vector.shape_cast %158 : vector<1x32x32xf32> to vector<32x32xf32>
    %160 = vector.shape_cast %82 : vector<32x32xf32> to vector<1x32x32xf32>
    tpu.vector_store %arg14[%c0_101, %c0_102, %c0_103], %160 {strides = array<i32>} : memref<2x32x32xf32, #tpu.memory_space<vmem>>, vector<1x32x32xf32>,
    %c1_104 = arith.constant 1 : index
    %c0_105 = arith.constant 0 : index
    %c0_106 = arith.constant 0 : index
    %161 = vector.load %arg14[%c1_104, %c0_105, %c0_106] : memref<2x32x32xf32, #tpu.memory_space<vmem>>, vector<1x32x32xf32>
    %162 = vector.shape_cast %161 : vector<1x32x32xf32> to vector<32x32xf32>
    %163 = vector.shape_cast %157 : vector<32x32xf32> to vector<1x32x32xf32>
    tpu.vector_store %arg14[%c1_104, %c0_105, %c0_106], %163 {strides = array<i32>} : memref<2x32x32xf32, #tpu.memory_space<vmem>>, vector<1x32x32xf32>,
    %c0_107 = arith.constant 0 : index
    %c0_108 = arith.constant 0 : index
    %164 = vector.load %arg11[%c0_107, %c0_108] : memref<1x32xf32, #tpu.memory_space<vmem>>, vector<1x32xf32>
    %165 = vector.broadcast %164 : vector<1x32xf32> to vector<32x32xf32>
    %166 = arith.mulf %157, %165 : vector<32x32xf32>
    %cst_109 = arith.constant dense<0.000000e+00> : vector<32xf32>
    %167 = vector.multi_reduction <add>, %166, %cst_109 [1] : vector<32x32xf32> to vector<32xf32>
    %168 = vector.shape_cast %167 : vector<32xf32> to vector<32x1xf32>
    %c0_110 = arith.constant 0 : index
    %c0_111 = arith.constant 0 : index
    %169 = vector.load %arg12[%c0_110, %c0_111] : memref<1x1xf32, #tpu.memory_space<vmem>>, vector<1x1xf32>
    %170 = vector.broadcast %169 : vector<1x1xf32> to vector<32x1xf32>
    %171 = arith.addf %168, %170 : vector<32x1xf32>
    %c0_112 = arith.constant 0 : index
    %c0_113 = arith.constant 0 : index
    %172 = vector.load %arg13[%c0_112, %c0_113] : memref<32x1xf32, #tpu.memory_space<vmem>>, vector<32x1xf32>
    tpu.vector_store %arg13[%c0_112, %c0_113], %171 {strides = array<i32>} : memref<32x1xf32, #tpu.memory_space<vmem>>, vector<32x1xf32>,
    return
  }
}

</mosaic_0001>

<bundles_post_ra>
// kernel: _lambda_.1
= control target key start
LH: loop header
LB: loop body
LE: loop exit
PB: predicated region body
PF: predicated region fallthrough
CT: control target
= control target key end

     0   :  { %s4888_s0 = inlined_call_operand.vmem [shape: f32[32,32], index: 0, kind: input, shape index: {}]   ;;  %s4889_s1 = inlined_call_operand.vmem [shape: f32[32,1], index: 1, kind: input, shape index: {}]   ;;  %s4890_s2 = inlined_call_operand.vmem [shape: f32[2,32,32], index: 2, kind: input, shape index: {}]   ;;  %s4891_s3 = inlined_call_operand.vmem [shape: f32[3,1,96], index: 3, kind: input, shape index: {}]   ;;  %s4892_s4 = inlined_call_operand.hbm [shape: f32[3,32,64], index: 4, kind: input, shape index: {}]   ;;  %s4893_s5 = inlined_call_operand.hbm [shape: f32[3,32,32], index: 5, kind: input, shape index: {}]   ;;  %s4894_s6 = inlined_call_operand.vmem [shape: f32[1,96], index: 6, kind: input, shape index: {}, may-alias: {6,10}]   ;;  %s4895_s7 = inlined_call_operand.hbm [shape: f32[3,32,96], index: 7, kind: input, shape index: {}]   ;;  %s4896_s8 = inlined_call_operand.hbm [shape: f32[3,32,64], index: 8, kind: input, shape index: {}]   ;;  %s4897_s9 = inlined_call_operand.vmem [shape: f32[3,32,32], index: 9, kind: input, shape index: {}]   ;;  %s4898_s10 = inlined_call_operand.vmem [shape: f32[1,96], index: 10, kind: input, shape index: {}, may-alias: {6,10}]   ;;  %s4899_s11 = inlined_call_operand.vmem [shape: f32[1,32], index: 11, kind: input, shape index: {}]   ;;  %s4900_s12 = inlined_call_operand.<no memory space> [shape: f32[1,1], index: 12, kind: input, shape index: {}]   ;;  %s4901_s13 = inlined_call_operand.vmem [shape: f32[32,1], index: 13, kind: output, shape index: {0}]   ;;  %s4902_s14 = inlined_call_operand.vmem [shape: f32[2,32,32], index: 14, kind: output, shape index: {1}]  }
   0x1   :  { %v20_v0 = vstv %s4900_s12 }
   0x2   :  { %21 = vst [vmem:[#allocation2] sm:$0x1] %v20_v0 }
   0x3   :  { %22 = vsyncpa [#allocation4], 0 }
   0x4   :  { %23 = vsyncpa [#allocation6], 0 }
   0x5   :  { %24 = vsyncpa [#allocation9], 0  ;;  %s4149_s15 = smov [#allocation5]   ;;  %s4150_s17 = smov [#allocation3]  }
   0x6   :  { %s50_s16 = sshll.u32 %s4149_s15, 4  ;;  %s38_s18 = sshll.u32 %s4150_s17, 4  ;;  %s51_s16 = int_to_ptr.vmem [resolvable:$true] %s50_s16  ;;  %s39_s18 = int_to_ptr.vmem [resolvable:$true] %s38_s18 }
   0x7   :  { %s4071_s19 = scalar_lea.vmem %s51_s16, 1536  ;;  %p4076_p1 = scmp.lt.s32.totalorder %s51_s16, %s51_s16 }
   0x8   :  { %p4072_p0 = scmp.ne.s32.totalorder %s51_s16, %s4071_s19  ;;  %p4077_p2 = scmp.lt.s32.totalorder %s4071_s19, %s4071_s19 }
   0xa   :  { %p4078_p3 = por %p4077_p2, %p4076_p1 }
   0xc   :  { %p4079_p4 = pnand %p4078_p3, %p4072_p0 }
   0xe   :  { %4082 = shalt.err (!%p4079_p4)
}
   0xf   :  { %s4151_s20 = smov 128   ;;  %s4152_s21 = smov 8  }
  0x10   :  { %56 = dma.hbm_to_vmem [thread:$0]  %s4893_s5, 1536, %s51_s16, [#allocation6], %s4151_s20, %s4151_s20, %s4152_s21  }
  0x11   :  { %s4091_s23 = scalar_lea.vmem %s39_s18, 1536  ;;  %p4096_p6 = scmp.lt.s32.totalorder %s39_s18, %s39_s18 }
  0x12   :  { %p4092_p5 = scmp.ne.s32.totalorder %s39_s18, %s4091_s23  ;;  %p4097_p7 = scmp.lt.s32.totalorder %s4091_s23, %s4091_s23 }
  0x14   :  { %p4098_p8 = por %p4097_p7, %p4096_p6 }
  0x16   :  { %p4099_p9 = pnand %p4098_p8, %p4092_p5 }
  0x18   :  { %4102 = shalt.err (!%p4099_p9)
}
  0x19   :  { %44 = dma.hbm_to_vmem [thread:$0]  %s4892_s4, 1536, %s39_s18, [#allocation4], %s4151_s20, %s4151_s20, %s4152_s21  }
  0x1a   :  { %s4153_s26 = smov [#allocation7]   ;;  %s4154_s28 = smov [#allocation8]  }
  0x1b   :  { %s64_s27 = sshll.u32 %s4153_s26, 4  ;;  %s76_s29 = sshll.u32 %s4154_s28, 4  ;;  %s65_s27 = int_to_ptr.vmem [resolvable:$true] %s64_s27  ;;  %s77_s29 = int_to_ptr.vmem [resolvable:$true] %s76_s29 }
  0x1c   :  { %s4111_s5 = scalar_lea.vmem %s65_s27, 1536  ;;  %p4116_p11 = scmp.lt.s32.totalorder %s65_s27, %s65_s27 }
  0x1d   :  { %p4112_p10 = scmp.ne.s32.totalorder %s65_s27, %s4111_s5  ;;  %p4117_p12 = scmp.lt.s32.totalorder %s4111_s5, %s4111_s5 }
  0x1f   :  { %p4118_p13 = por %p4117_p12, %p4116_p11 }
  0x21   :  { %p4119_p0 = pnand %p4118_p13, %p4112_p10 }
  0x23   :  { %4122 = shalt.err (!%p4119_p0)
}
  0x24   :  { %70 = dma.hbm_to_vmem [thread:$0]  %s4895_s7, 1536, %s65_s27, [#allocation6], %s4151_s20, %s4151_s20, %s4152_s21  }
  0x25   :  { %s4131_s4 = scalar_lea.vmem %s77_s29, 1536  ;;  %p4136_p2 = scmp.lt.s32.totalorder %s77_s29, %s77_s29 }
  0x26   :  { %p4132_p1 = scmp.ne.s32.totalorder %s77_s29, %s4131_s4  ;;  %p4137_p3 = scmp.lt.s32.totalorder %s4131_s4, %s4131_s4 }
  0x28   :  { %p4138_p4 = por %p4137_p3, %p4136_p2 }
  0x2a   :  { %p4139_p5 = pnand %p4138_p4, %p4132_p1 }
  0x2c   :  { %4142 = shalt.err (!%p4139_p5)
}
  0x2d   :  { %82 = dma.hbm_to_vmem [thread:$0]  %s4896_s8, 1536, %s77_s29, [#allocation9], %s4151_s20, %s4151_s20, %s4152_s21  }
  0x2e   :  { %4143 = dma.done.wait [#allocation4], 1536  }
  0x2f   :  { %4144 = vsyncadd [#allocation4], 4294965760 }
  0x30   :  { %4145 = dma.done.wait [#allocation6], 3072  }
  0x31   :  { %4146 = vsyncadd [#allocation6], 4294964224 }
  0x32   :  { %4147 = dma.done.wait [#allocation9], 1536  }
  0x33   :  { %4148 = vsyncadd [#allocation9], 4294965760  ;;  %v4155_v1 = vmov 0   ;;  %vm115_vm0 = vcmask 261120   ;;  %v4264_v2 = vld [vmem:[%s4889_s1 + $0x18] sm:$0xff]  ;;  %v4269_v3 = vld [vmem:[%s4889_s1 + $0x10] sm:$0xff] }
  0x34   :  { %4009 = vset.pattern.permute.xlu0 %v4155_v1  ;;  %4010 = vset.pattern.permute.xlu1 %v4155_v1  ;;  %v4275_v4 = vld [vmem:[%s4888_s0] sm:$0xff]  ;;  %v4282_v5 = vld [vmem:[%s4889_s1 + $0x8] sm:$0xff]  ;;  %v4307_v8 = vld [vmem:[%s4890_s2 + $0x18] sm:$0xff]  ;;  %s4157_s24 = smov 32   ;;  %s4158_s25 = smov 96   ;;  %vm3240_vm1 = vcmask 7168  }
  0x35   :  { %3613 = vmatprep.subr.mxu0 %v4264_v2  ;;  %503 = vperm.xlu0 %4009, %v4264_v2   ;;  %v4292_v6 = vld [vmem:[%s4889_s1] sm:$0xff]  ;;  %v4302_v7 = vld [vmem:[%s4888_s0 + $0x8] sm:$0xff]  ;;  %v4313_v9 = vld [vmem:[%s4888_s0 + $0x10] sm:$0xff] }
  0x36   :  { %3614 = vmatpush3.msra.mxu0 %v4264_v2  ;;  %3621 = vmatprep.mubr.msk.f32.mxu0 %vm115_vm0, %v4275_v4  ;;  %v4320_v10 = vld [vmem:[%s4890_s2 + $0x10] sm:$0xff]  ;;  %v4331_v11 = vld [vmem:[%s4888_s0 + $0x18] sm:$0xff]  ;;  %v4336_v12 = vld [vmem:[%s4890_s2 + $0x8] sm:$0xff] }
  0x37   :  { %3615 = vmatprep.subr.mxu0 %v4269_v3  ;;  %498 = vperm.xlu1 %4010, %v4269_v3   ;;  %v4343_v13 = vld [vmem:[%s4890_s2] sm:$0xff]  ;;  %v600_v19 = vld [vmem:[#allocation3 + $0x10] sm:$0xff]  ;;  %v599_v21 = vld [vmem:[#allocation3 + $0x8] sm:$0xff] }
  0x38   :  { %3616 = vmatpush3.msra.mxu0 %v4269_v3  ;;  %3635 = vmatprep.mubr.msk.f32.mxu1 %vm115_vm0, %v4275_v4  ;;  %v601_v17 = vld [vmem:[#allocation3 + $0x18] sm:$0xff]  ;;  %v598_v24 = vld [vmem:[#allocation3] sm:$0xff]  ;;  %v706_v27 = vld [vmem:[#allocation3 + $0x30] sm:$0xff] }
  0x39   :  { %3617 = vmatprep.subr.mxu0 %v4282_v5  ;;  %488 = vperm.xlu0 %4009, %v4292_v6   ;;  %v707_v26 = vld [vmem:[#allocation3 + $0x38] sm:$0xff]  ;;  %v705_v28 = vld [vmem:[#allocation3 + $0x28] sm:$0xff]  ;;  %v704_v29 = vld [vmem:[#allocation3 + $0x20] sm:$0xff] }
  0x3a   :  { %3618 = vmatpush3.msra.mxu0 %v4282_v5  ;;  %v813_v30 = vld [vmem:[#allocation3 + $0x58] sm:$0xff]  ;;  %v812_v31 = vld [vmem:[#allocation3 + $0x50] sm:$0xff]  ;;  %v811_v32 = vld [vmem:[#allocation3 + $0x48] sm:$0xff] }
  0x3b   :  { %3619 = vmatprep.subr.mxu0 %v4292_v6  ;;  %493 = vperm.xlu1 %4010, %v4282_v5   ;;  %v810_v33 = vld [vmem:[#allocation3 + $0x40] sm:$0xff] }
  0x3c   :  { %3620 = vmatpush3.msra.mxu0 %v4292_v6 }
  0x3d   :  { %3622 = vmatmul.mubr.msk.f32.vlgmr.msra.gmra.mxu0 %vm115_vm0, %v4302_v7  ;;  %3641 = vmatprep.subr.mxu0 %v4307_v8 }
  0x3e   :  { %3642 = vmatpush3.msra.mxu0 %v4307_v8  ;;  %3624 = vmatprep.mubr.msk.f32.mxu0 %vm115_vm0, %v4313_v9 }
  0x3f   :  { %3643 = vmatprep.subr.mxu0 %v4320_v10 }
  0x40   :  { %3644 = vmatpush3.msra.mxu0 %v4320_v10 }
  0x41   :  { %3625 = vmatmul.mubr.msk.f32.gmra.mxu0 %vm115_vm0, %v4331_v11  ;;  %3645 = vmatprep.subr.mxu0 %v4336_v12 }
  0x42   :  { %3646 = vmatpush3.msra.mxu0 %v4336_v12  ;;  %3649 = vmatprep.mubr.msk.f32.mxu0 %vm115_vm0, %v4275_v4 }
  0x43   :  { %3647 = vmatprep.subr.mxu0 %v4343_v13 }
  0x44   :  { %3648 = vmatpush3.msra.mxu0 %v4343_v13 }
  0x45   :  { %3650 = vmatmul.mubr.msk.f32.vlgmr.msra.gmra.mxu0 %vm115_vm0, %v4302_v7  ;;  %3669 = vmatprep.subr.mxu0 %v601_v17 }
  0x46   :  { %3652 = vmatprep.mubr.msk.f32.mxu0 %vm115_vm0, %v4313_v9  ;;  %3670 = vmatpush3.msra.mxu0 %v601_v17  ;;  %v3276_v17 = vld [vmem:[%s4891_s3 + $0x2] ss:$0 sm:$0xff] }
  0x47   :  { %3671 = vmatprep.subr.mxu0 %v600_v19 }
  0x48   :  { %3672 = vmatpush3.msra.mxu0 %v600_v19 }
  0x49   :  { %3653 = vmatmul.mubr.msk.f32.gmra.mxu0 %vm115_vm0, %v4331_v11  ;;  %3673 = vmatprep.subr.mxu0 %v599_v21 }
  0x4a   :  { %3677 = vmatprep.mubr.msk.f32.mxu0 %vm115_vm0, %v4343_v13  ;;  %3674 = vmatpush3.msra.mxu0 %v599_v21 }
  0x4b   :  { %3675 = vmatprep.subr.mxu0 %v598_v24 }
  0x4c   :  { %3676 = vmatpush3.msra.mxu0 %v598_v24 }
  0x4d   :  { %3678 = vmatmul.mubr.msk.f32.vlgmr.msra.gmra.mxu0 %vm115_vm0, %v4336_v12  ;;  %3697 = vmatprep.subr.mxu0 %v813_v30 }
  0x4e   :  { %3680 = vmatprep.mubr.msk.f32.mxu0 %vm115_vm0, %v4320_v10  ;;  %3698 = vmatpush3.msra.mxu0 %v813_v30 }
  0x4f   :  { %3699 = vmatprep.subr.mxu0 %v812_v31 }
  0x50   :  { %3700 = vmatpush3.msra.mxu0 %v812_v31 }
  0x51   :  { %3681 = vmatmul.mubr.msk.f32.gmra.mxu0 %vm115_vm0, %v4307_v8  ;;  %3701 = vmatprep.subr.mxu0 %v811_v32 }
  0x52   :  { %3702 = vmatpush3.msra.mxu0 %v811_v32 }
  0x53   :  { %3703 = vmatprep.subr.mxu0 %v810_v33 }
  0x54   :  { %3704 = vmatpush3.msra.mxu0 %v810_v33 }
  0xb0   :  { %v504_v58 = vpop.permute.xlu0 %503 }
  0xb2   :  { %v499_v59 = vpop.permute.xlu1 %498 }
  0xb4   :  { %v489_v60 = vpop.permute.xlu0 %488 }
  0xb6   :  { %v494_v61 = vpop.permute.xlu1 %493 }
  0xfd   :  { %v3623_v14 = vpop.f32.mrf.mxu0 }
  0xfe   :  { %525 = vperm.xlu0 %4009, %v3623_v14  }
  0xff   :  { %v194_v15 = vpop.f32.mrf.mxu0 }
 0x100   :  { %520 = vperm.xlu1 %4010, %v194_v15  }
 0x101   :  { %v3626_v16 = vpop.f32.mrf.mxu0 }
 0x102   :  { %535 = vperm.xlu0 %4009, %v3626_v16   ;;  %3627 = vmatprep.subr.mxu1 %v3626_v16 }
 0x103   :  { %v204_v18 = vpop.f32.mrf.mxu0  ;;  %3628 = vmatpush3.msra.mxu1 %v3626_v16 }
 0x104   :  { %530 = vperm.xlu1 %4010, %v204_v18   ;;  %3629 = vmatprep.subr.mxu1 %v204_v18 }
 0x105   :  { %3630 = vmatpush3.msra.mxu1 %v204_v18  ;;  %v3651_v20 = vpop.f32.mrf.mxu0 }
 0x106   :  { %3631 = vmatprep.subr.mxu1 %v3623_v14 }
 0x107   :  { %3632 = vmatpush3.msra.mxu1 %v3623_v14  ;;  %v372_v22 = vpop.f32.mrf.mxu0 }
 0x108   :  { %3633 = vmatprep.subr.mxu1 %v194_v15 }
 0x109   :  { %3634 = vmatpush3.msra.mxu1 %v194_v15  ;;  %v3654_v23 = vpop.f32.mrf.mxu0 }
 0x10a   :  { %3636 = vmatmul.mubr.msk.f32.vlgmr.msra.gmra.mxu1 %vm115_vm0, %v4302_v7  ;;  %3655 = vmatprep.subr.mxu1 %v3654_v23 }
 0x10b   :  { %v382_v25 = vpop.f32.mrf.mxu0  ;;  %3656 = vmatpush3.msra.mxu1 %v3654_v23  ;;  %3638 = vmatprep.mubr.msk.f32.mxu1 %vm115_vm0, %v4313_v9 }
 0x10c   :  { %3657 = vmatprep.subr.mxu1 %v382_v25 }
 0x10d   :  { %3658 = vmatpush3.msra.mxu1 %v382_v25 }
 0x10e   :  { %3639 = vmatmul.mubr.msk.f32.gmra.mxu1 %vm115_vm0, %v4331_v11  ;;  %3659 = vmatprep.subr.mxu1 %v3651_v20 }
 0x10f   :  { %3660 = vmatpush3.msra.mxu1 %v3651_v20  ;;  %3663 = vmatprep.mubr.msk.f32.mxu1 %vm115_vm0, %v4275_v4 }
 0x110   :  { %3661 = vmatprep.subr.mxu1 %v372_v22 }
 0x111   :  { %3662 = vmatpush3.msra.mxu1 %v372_v22 }
 0x112   :  { %3664 = vmatmul.mubr.msk.f32.vlgmr.msra.gmra.mxu1 %vm115_vm0, %v4302_v7  ;;  %3683 = vmatprep.subr.mxu1 %v707_v26 }
 0x113   :  { %3684 = vmatpush3.msra.mxu1 %v707_v26  ;;  %3666 = vmatprep.mubr.msk.f32.mxu1 %vm115_vm0, %v4313_v9 }
 0x114   :  { %3685 = vmatprep.subr.mxu1 %v706_v27 }
 0x115   :  { %3686 = vmatpush3.msra.mxu1 %v706_v27  ;;  %v3679_v27 = vpop.f32.mrf.mxu0 }
 0x116   :  { %3667 = vmatmul.mubr.msk.f32.gmra.mxu1 %vm115_vm0, %v4331_v11  ;;  %3687 = vmatprep.subr.mxu1 %v705_v28 }
 0x117   :  { %3688 = vmatpush3.msra.mxu1 %v705_v28  ;;  %3691 = vmatprep.mubr.msk.f32.mxu1 %vm115_vm0, %v372_v22 }
 0x118   :  { %3689 = vmatprep.subr.mxu1 %v704_v29 }
 0x119   :  { %3690 = vmatpush3.msra.mxu1 %v704_v29 }
 0x11a   :  { %3692 = vmatmul.mubr.msk.f32.vlgmr.msra.gmra.mxu1 %vm115_vm0, %v3651_v20 }
 0x11b   :  { %3694 = vmatprep.mubr.msk.f32.mxu1 %vm115_vm0, %v382_v25 }
 0x11e   :  { %3695 = vmatmul.mubr.msk.f32.gmra.mxu1 %vm115_vm0, %v3654_v23 }
 0x11f   :  { %3719 = vmatprep.mubr.msk.f32.mxu1 %vm115_vm0, %v4275_v4 }
 0x179   :  { %v526_v62 = vpop.permute.xlu0 %525 }
 0x17b   :  { %v521_v63 = vpop.permute.xlu1 %520 }
 0x17d   :  { %v536_v0 = vpop.permute.xlu0 %535 }
 0x17f   :  { %v531_v1 = vpop.permute.xlu1 %530 }
 0x1ca   :  { %v3637_v34 = vpop.f32.mrf.mxu1 }
 0x1cb   :  { %v299_v39 = vmul.f32 2.0, %v3637_v34 }
 0x1cc   :  { %v279_v35 = vpop.f32.mrf.mxu1 }
 0x1cd   :  { %v298_v43 = vmul.f32 2.0, %v279_v35  ;;  %v303_v47 = vsub.f32 %v299_v39, %v4282_v5  ;;  %v3272_v5 = vld [vmem:[%s4891_s3] ss:$0 sm:$0xff]  ;;  %v680_v35 = vpop.f32.mrf.mxu0 }
 0x1ce   :  { %v3640_v36 = vpop.f32.mrf.mxu1  ;;  %v513_v15 = vmul.f32 %v3272_v5, %v494_v61  ;;  %v512_v19 = vmul.f32 %v3272_v5, %v489_v60  ;;  %v515_v22 = vmul.f32 %v3272_v5, %v504_v58  ;;  %v514_v26 = vmul.f32 %v3272_v5, %v499_v59 }
 0x1cf   :  { %v301_v37 = vmul.f32 2.0, %v3640_v36  ;;  %v302_v50 = vsub.f32 %v298_v43, %v4292_v6  ;;  %v3274_v6 = vld [vmem:[%s4891_s3 + $0x1] ss:$0 sm:$0xff]  ;;  %v3277_v36 = vld [vmem:[%s4894_s6] ss:$0 sm:$0xff]  ;;  %v3682_v43 = vpop.f32.mrf.mxu0  ;;  %s4156_s6 = smov 64  }
 0x1d0   :  { %v289_v38 = vpop.f32.mrf.mxu1  ;;  %v545_v16 = vmul.f32 %v3274_v6, %v526_v62  ;;  %v544_v20 = vmul.f32 %v3274_v6, %v521_v63  ;;  %v547_v24 = vmul.f32 %v3274_v6, %v536_v0  ;;  %v546_v29 = vmul.f32 %v3274_v6, %v531_v1 }
 0x1d1   :  { %v305_v40 = vsub.f32 %v301_v37, %v4264_v2  ;;  %v300_v41 = vmul.f32 2.0, %v289_v38 }
 0x1d2   :  { %v3665_v42 = vpop.f32.mrf.mxu1  ;;  %v549_v23 = vadd.f32 %v545_v16, %v513_v15  ;;  %v548_v28 = vadd.f32 %v544_v20, %v512_v19  ;;  %v551_v32 = vadd.f32 %v547_v24, %v515_v22  ;;  %v550_v37 = vadd.f32 %v546_v29, %v514_v26 }
 0x1d3   :  { %v304_v44 = vsub.f32 %v300_v41, %v4269_v3  ;;  %571 = vperm.xlu0 %4009, %v305_v40   ;;  %v477_v45 = vmul.f32 2.0, %v3665_v42 }
 0x1d4   :  { %v457_v46 = vpop.f32.mrf.mxu1 }
 0x1d5   :  { %v476_v48 = vmul.f32 2.0, %v457_v46  ;;  %566 = vperm.xlu1 %4010, %v304_v44   ;;  %v481_v52 = vsub.f32 %v477_v45, %v4336_v12 }
 0x1d6   :  { %v3668_v49 = vpop.f32.mrf.mxu1 }
 0x1d7   :  { %v480_v51 = vsub.f32 %v476_v48, %v4343_v13  ;;  %561 = vperm.xlu0 %4009, %v303_v47   ;;  %v479_v53 = vmul.f32 2.0, %v3668_v49  ;;  %v690_v49 = vpop.f32.mrf.mxu0 }
 0x1d8   :  { %v467_v54 = vpop.f32.mrf.mxu1 }
 0x1d9   :  { %v478_v55 = vmul.f32 2.0, %v467_v54  ;;  %3705 = vmatprep.mubr.msk.f32.mxu0 %vm115_vm0, %v480_v51  ;;  %556 = vperm.xlu1 %4010, %v302_v50   ;;  %v483_v57 = vsub.f32 %v479_v53, %v4307_v8 }
 0x1da   :  { %3706 = vmatmul.mubr.msk.f32.vlgmr.msra.gmra.mxu0 %vm115_vm0, %v481_v52  ;;  %v3693_v40 = vpop.f32.mrf.mxu1 }
 0x1db   :  { %v482_v56 = vsub.f32 %v478_v55, %v4320_v10 }
 0x1dc   :  { %v786_v46 = vpop.f32.mrf.mxu1 }
 0x1dd   :  { %3708 = vmatprep.mubr.msk.f32.mxu0 %vm115_vm0, %v482_v56 }
 0x1de   :  { %3709 = vmatmul.mubr.msk.f32.gmra.mxu0 %vm115_vm0, %v483_v57  ;;  %v3696_v52 = vpop.f32.mrf.mxu1 }
 0x1df   :  { %3733 = vmatprep.mubr.msk.f32.mxu0 %vm115_vm0, %v4275_v4 }
 0x1e0   :  { %v796_v61 = vpop.f32.mrf.mxu1 }
 0x24e   :  { %v572_v2 = vpop.permute.xlu0 %571 }
 0x24f   :  { %v583_v30 = vmul.f32 %v3276_v17, %v572_v2 }
 0x250   :  { %v567_v3 = vpop.permute.xlu1 %566 }
 0x251   :  { %v582_v33 = vmul.f32 %v3276_v17, %v567_v3  ;;  %v587_v38 = vadd.f32 %v583_v30, %v551_v32  ;;  %v1124_v30 = vld [vmem:[#allocation5 + $0x18] sm:$0xff]  ;;  %v1122_v32 = vld [vmem:[#allocation5 + $0x8] sm:$0xff] }
 0x252   :  { %v562_v14 = vpop.permute.xlu0 %561 }
 0x253   :  { %v581_v21 = vmul.f32 %v3276_v17, %v562_v14  ;;  %v586_v41 = vadd.f32 %v582_v33, %v550_v37  ;;  %v4417_v44 = vadd.f32 %v3277_v36, %v587_v38  ;;  %v1121_v33 = vld [vmem:[#allocation5] sm:$0xff] }
 0x254   :  { %v557_v18 = vpop.permute.xlu1 %556 }
 0x255   :  { %v580_v25 = vmul.f32 %v3276_v17, %v557_v18  ;;  %v585_v31 = vadd.f32 %v581_v21, %v549_v23  ;;  %v4420_v47 = vadd.f32 %v3277_v36, %v586_v41  ;;  %v702_v50 = vadd.f32 %v3682_v43, %v4417_v44  ;;  %v1246_v41 = vld [vmem:[#allocation5 + $0x38] sm:$0xff] }
 0x257   :  { %v584_v34 = vadd.f32 %v580_v25, %v548_v28  ;;  %v4413_v39 = vadd.f32 %v3277_v36, %v585_v31  ;;  %v701_v54 = vadd.f32 %v690_v49, %v4420_v47  ;;  %v808_v60 = vadd.f32 %v3696_v52, %v702_v50  ;;  %v1123_v31 = vld [vmem:[#allocation5 + $0x10] sm:$0xff]  ;;  %v1243_v49 = vld [vmem:[#allocation5 + $0x20] sm:$0xff]  ;;  %v1368_v50 = vld [vmem:[#allocation5 + $0x58] sm:$0xff] }
 0x258   :  { %v1366_v52 = vld [vmem:[#allocation5 + $0x48] sm:$0xff] }
 0x259   :  { %v4415_v42 = vadd.f32 %v3277_v36, %v584_v34  ;;  %v700_v45 = vadd.f32 %v3679_v27, %v4413_v39  ;;  %v807_v1 = vadd.f32 %v796_v61, %v701_v54 }
 0x25b   :  { %v699_v48 = vadd.f32 %v680_v35, %v4415_v42  ;;  %v806_v51 = vadd.f32 %v3693_v40, %v700_v45  ;;  %v1245_v45 = vld [vmem:[#allocation5 + $0x30] sm:$0xff] }
 0x25d   :  { %v805_v56 = vadd.f32 %v786_v46, %v699_v48  ;;  %v1244_v48 = vld [vmem:[#allocation5 + $0x28] sm:$0xff] }
 0x29a   :  { %v3707_v53 = vpop.f32.mrf.mxu0 }
 0x29b   :  { %v912_v55 = vadd.f32 %v3707_v53, %v806_v51  ;;  %v1367_v51 = vld [vmem:[#allocation5 + $0x50] sm:$0xff]  ;;  %v1365_v53 = vld [vmem:[#allocation5 + $0x40] sm:$0xff] }
 0x29c   :  { %v892_v57 = vpop.f32.mrf.mxu0 }
 0x29d   :  { %v3291_v58 = vmul.f32 -1.442695, %v912_v55  ;;  %v911_v59 = vadd.f32 %v892_v57, %v805_v56 }
 0x29e   :  { %v3710_v62 = vpop.f32.mrf.mxu0 }
 0x29f   :  { %v3290_v63 = vmul.f32 -1.442695, %v911_v59  ;;  %v914_v0 = vadd.f32 %v3710_v62, %v808_v60  ;;  %4011 = vpow2.f32 %v3291_v58 }
 0x2a0   :  { %v902_v2 = vpop.f32.mrf.mxu0 }
 0x2a1   :  { %v3293_v3 = vmul.f32 -1.442695, %v914_v0  ;;  %v913_v5 = vadd.f32 %v902_v2, %v807_v1  ;;  %4013 = vpow2.f32 %v3290_v63 }
 0x2a3   :  { %4015 = vpow2.f32 %v3293_v3  ;;  %v3292_v6 = vmul.f32 -1.442695, %v913_v5 }
 0x2a5   :  { %4017 = vpow2.f32 %v3292_v6 }
 0x2ac   :  { %v4012_v14 = vpop.eup %4011 }
 0x2ad   :  { %v928_v17 = vadd.f32 1.0, %v4012_v14 }
 0x2ae   :  { %v4014_v15 = vpop.eup %4013 }
 0x2af   :  { %v927_v20 = vadd.f32 1.0, %v4014_v15 }
 0x2b0   :  { %v4016_v16 = vpop.eup %4015 }
 0x2b1   :  { %v930_v18 = vadd.f32 1.0, %v4016_v16 }
 0x2b2   :  { %v4018_v19 = vpop.eup %4017 }
 0x2b3   :  { %4019 = vrcp.f32 %v930_v18  ;;  %v929_v21 = vadd.f32 1.0, %v4018_v19 }
 0x2b4   :  { %4021 = vrcp.f32 %v928_v17 }
 0x2b5   :  { %4023 = vrcp.f32 %v929_v21 }
 0x2b6   :  { %4025 = vrcp.f32 %v927_v20 }
 0x2c0   :  { %v4425_v22 = vpop.eup %4019 }
 0x2c1   :  { %v4427_v23 = vpop.eup %4021  ;;  %v4431_v24 = vmul.f32 %v4425_v22, %v4307_v8 }
 0x2c2   :  { %v4433_v25 = vpop.eup %4023  ;;  %v4446_v28 = vmul.f32 %v4427_v23, %v4336_v12 }
 0x2c3   :  { %3711 = vmatprep.subr.mxu1 %v4431_v24  ;;  %v4438_v26 = vmul.f32 %v4433_v25, %v4320_v10  ;;  %v4440_v27 = vpop.eup %4025 }
 0x2c4   :  { %3712 = vmatpush3.msra.mxu1 %v4431_v24  ;;  %v4452_v29 = vmul.f32 %v4440_v27, %v4343_v13 }
 0x2c5   :  { %3713 = vmatprep.subr.mxu1 %v4438_v26 }
 0x2c6   :  { %3714 = vmatpush3.msra.mxu1 %v4438_v26 }
 0x2c7   :  { %3715 = vmatprep.subr.mxu1 %v4446_v28 }
 0x2c8   :  { %3716 = vmatpush3.msra.mxu1 %v4446_v28 }
 0x2c9   :  { %3717 = vmatprep.subr.mxu1 %v4452_v29 }
 0x2ca   :  { %3718 = vmatpush3.msra.mxu1 %v4452_v29 }
 0x2cb   :  { %3720 = vmatmul.mubr.msk.f32.vlgmr.msra.gmra.mxu1 %vm115_vm0, %v4302_v7  ;;  %3739 = vmatprep.subr.mxu1 %v1124_v30 }
 0x2cc   :  { %3740 = vmatpush3.msra.mxu1 %v1124_v30  ;;  %3722 = vmatprep.mubr.msk.f32.mxu1 %vm115_vm0, %v4313_v9 }
 0x2cd   :  { %3741 = vmatprep.subr.mxu1 %v1123_v31 }
 0x2ce   :  { %3742 = vmatpush3.msra.mxu1 %v1123_v31 }
 0x2cf   :  { %3723 = vmatmul.mubr.msk.f32.gmra.mxu1 %vm115_vm0, %v4331_v11  ;;  %3743 = vmatprep.subr.mxu1 %v1122_v32 }
 0x2d0   :  { %3744 = vmatpush3.msra.mxu1 %v1122_v32  ;;  %3747 = vmatprep.mubr.msk.f32.mxu1 %vm115_vm0, %v4452_v29 }
 0x2d1   :  { %3745 = vmatprep.subr.mxu1 %v1121_v33 }
 0x2d2   :  { %3746 = vmatpush3.msra.mxu1 %v1121_v33 }
 0x2d3   :  { %3748 = vmatmul.mubr.msk.f32.vlgmr.msra.gmra.mxu1 %vm115_vm0, %v4446_v28  ;;  %3767 = vmatprep.subr.mxu1 %v1368_v50 }
 0x2d4   :  { %3750 = vmatprep.mubr.msk.f32.mxu1 %vm115_vm0, %v4438_v26  ;;  %3768 = vmatpush3.msra.mxu1 %v1368_v50 }
 0x2d5   :  { %3769 = vmatprep.subr.mxu1 %v1367_v51 }
 0x2d6   :  { %3770 = vmatpush3.msra.mxu1 %v1367_v51 }
 0x2d7   :  { %3751 = vmatmul.mubr.msk.f32.gmra.mxu1 %vm115_vm0, %v4431_v24  ;;  %3771 = vmatprep.subr.mxu1 %v1366_v52 }
 0x2d8   :  { %3772 = vmatpush3.msra.mxu1 %v1366_v52 }
 0x2d9   :  { %3773 = vmatprep.subr.mxu1 %v1365_v53 }
 0x2da   :  { %3774 = vmatpush3.msra.mxu1 %v1365_v53  ;;  %v1507_v53 = vsub.f32 1.0, %v4427_v23 }
 0x38b   :  { %v3721_v34 = vpop.f32.mrf.mxu1 }
 0x38d   :  { %v1009_v35 = vpop.f32.mrf.mxu1 }
 0x38f   :  { %v3724_v36 = vpop.f32.mrf.mxu1 }
 0x390   :  { %3725 = vmatprep.subr.mxu0 %v3724_v36 }
 0x391   :  { %v1019_v37 = vpop.f32.mrf.mxu1  ;;  %3726 = vmatpush3.msra.mxu0 %v3724_v36 }
 0x392   :  { %3727 = vmatprep.subr.mxu0 %v1019_v37 }
 0x393   :  { %3728 = vmatpush3.msra.mxu0 %v1019_v37  ;;  %v3749_v38 = vpop.f32.mrf.mxu1 }
 0x394   :  { %1228 = vrot.lane.b32.xlu1 %v3749_v38, %s4156_s6  ;;  %3729 = vmatprep.subr.mxu0 %v3721_v34 }
 0x395   :  { %3730 = vmatpush3.msra.mxu0 %v3721_v34  ;;  %v1203_v40 = vpop.f32.mrf.mxu1 }
 0x396   :  { %1226 = vrot.lane.b32.xlu0 %v1203_v40, %s4156_s6  ;;  %3731 = vmatprep.subr.mxu0 %v1009_v35 }
 0x397   :  { %3732 = vmatpush3.msra.mxu0 %v1009_v35  ;;  %v3752_v43 = vpop.f32.mrf.mxu1 }
 0x398   :  { %3734 = vmatmul.mubr.msk.f32.vlgmr.msra.gmra.mxu0 %vm115_vm0, %v4302_v7  ;;  %3753 = vmatprep.subr.mxu0 %v1246_v41 }
 0x399   :  { %v1213_v46 = vpop.f32.mrf.mxu1  ;;  %3754 = vmatpush3.msra.mxu0 %v1246_v41  ;;  %3736 = vmatprep.mubr.msk.f32.mxu0 %vm115_vm0, %v4313_v9 }
 0x39a   :  { %1232 = vrot.lane.b32.xlu0 %v3752_v43, %s4156_s6  ;;  %1230 = vrot.lane.b32.xlu1 %v1213_v46, %s4156_s6 }
 0x39b   :  { %3755 = vmatprep.subr.mxu0 %v1245_v45 }
 0x39c   :  { %3756 = vmatpush3.msra.mxu0 %v1245_v45 }
 0x39d   :  { %3737 = vmatmul.mubr.msk.f32.gmra.mxu0 %vm115_vm0, %v4331_v11  ;;  %3757 = vmatprep.subr.mxu0 %v1244_v48 }
 0x39e   :  { %3758 = vmatpush3.msra.mxu0 %v1244_v48  ;;  %3761 = vmatprep.mubr.msk.f32.mxu0 %vm115_vm0, %v1009_v35 }
 0x39f   :  { %3759 = vmatprep.subr.mxu0 %v1243_v49 }
 0x3a0   :  { %3760 = vmatpush3.msra.mxu0 %v1243_v49  ;;  %v1509_v49 = vsub.f32 1.0, %v4425_v22 }
 0x3a1   :  { %3762 = vmatmul.mubr.msk.f32.vlgmr.msra.gmra.mxu0 %vm115_vm0, %v3721_v34 }
 0x3a2   :  { %3764 = vmatprep.mubr.msk.f32.mxu0 %vm115_vm0, %v1019_v37 }
 0x3a5   :  { %3765 = vmatmul.mubr.msk.f32.gmra.mxu0 %vm115_vm0, %v3724_v36 }
 0x3a6   :  { %3789 = vmatprep.mubr.msk.f32.mxu0 %vm115_vm0, %v4275_v4 }
 0x406   :  { %v1229_v20 = vpop.permute.xlu1 %1228 }
 0x408   :  { %v1227_v18 = vpop.permute.xlu0 %1226 }
 0x409   :  { %v1238_v37 = vadd.f32 %v1227_v18, %v4415_v42  ;;  %v1920_v18 = vld [vmem:[#allocation7 + $0x38] sm:$0xff] }
 0x40c   :  { %v1233_v19 = vpop.permute.xlu0 %1232 }
 0x40d   :  { %v1241_v31 = vadd.f32 %v1233_v19, %v4417_v44  ;;  %v1919_v19 = vld [vmem:[#allocation7 + $0x30] sm:$0xff] }
 0x458   :  { %v3735_v54 = vpop.f32.mrf.mxu0 }
 0x459   :  { %v1114_v55 = vmul.f32 2.0, %v3735_v54 }
 0x45a   :  { %v1094_v56 = vpop.f32.mrf.mxu0 }
 0x45b   :  { %v1113_v57 = vmul.f32 2.0, %v1094_v56  ;;  %v1118_v60 = vsub.f32 %v1114_v55, %v4446_v28 }
 0x45d   :  { %v1117_v58 = vsub.f32 %v1113_v57, %v4452_v29  ;;  %v3738_v59 = vpop.f32.mrf.mxu0  ;;  %v1508_v57 = vsub.f32 1.0, %v4433_v25 }
 0x45e   :  { %v1116_v61 = vmul.f32 2.0, %v3738_v59 }
 0x45f   :  { %v1104_v62 = vpop.f32.mrf.mxu0  ;;  %3775 = vmatprep.mubr.msk.f32.mxu1 %vm115_vm0, %v1117_v58 }
 0x460   :  { %v1115_v63 = vmul.f32 2.0, %v1104_v62  ;;  %3776 = vmatmul.mubr.msk.f32.vlgmr.msra.gmra.mxu1 %vm115_vm0, %v1118_v60  ;;  %v1120_v2 = vsub.f32 %v1116_v61, %v4431_v24  ;;  %v1231_v24 = vpop.permute.xlu1 %1230 }
 0x461   :  { %v3763_v0 = vpop.f32.mrf.mxu0 }
 0x462   :  { %v1119_v1 = vsub.f32 %v1115_v63, %v4438_v26  ;;  %1350 = vrot.lane.b32.xlu1 %v3763_v0, %s4156_s6 }
 0x463   :  { %v1325_v3 = vpop.f32.mrf.mxu0 }
 0x464   :  { %3778 = vmatprep.mubr.msk.f32.mxu1 %vm115_vm0, %v1119_v1 }
 0x465   :  { %v3766_v5 = vpop.f32.mrf.mxu0  ;;  %3779 = vmatmul.mubr.msk.f32.gmra.mxu1 %vm115_vm0, %v1120_v2 }
 0x466   :  { %1354 = vrot.lane.b32.xlu0 %v3766_v5, %s4156_s6  ;;  %3803 = vmatprep.mubr.msk.f32.mxu1 %vm115_vm0, %v4275_v4 }
 0x467   :  { %v1335_v6 = vpop.f32.mrf.mxu0 }
 0x46a   :  { %1352 = vrot.lane.b32.xlu0 %v1335_v6, %s4156_s6 }
 0x4d4   :  { %v1351_v26 = vpop.permute.xlu1 %1350 }
 0x4d8   :  { %v1355_v21 = vpop.permute.xlu0 %1354 }
 0x4d9   :  { %v1363_v33 = vadd.f32 %v1355_v21, %v1241_v31  ;;  %v1917_v21 = vld [vmem:[#allocation7 + $0x20] sm:$0xff] }
 0x4dc   :  { %v1353_v28 = vpop.permute.xlu0 %1352 }
 0x520   :  { %v3777_v14 = vpop.f32.mrf.mxu1 }
 0x522   :  { %v1447_v15 = vpop.f32.mrf.mxu1 }
 0x525   :  { %v3780_v16 = vpop.f32.mrf.mxu1 }
 0x526   :  { %1476 = vrot.lane.b32.xlu1 %v3780_v16, %s4156_s6  ;;  %v4588_v16 = vld [vmem:[%s4890_s2 + $0x28] sm:$0xff] }
 0x527   :  { %v1457_v17 = vpop.f32.mrf.mxu1 }
 0x528   :  { %1474 = vrot.lane.b32.xlu0 %v1457_v17, %s4156_s6  ;;  %v4595_v17 = vld [vmem:[%s4890_s2 + $0x20] sm:$0xff] }
 0x52a   :  { %1348 = vrot.lane.b32.xlu1 %v1325_v3, %s4156_s6 }
 0x52c   :  { %1472 = vrot.lane.b32.xlu0 %v3777_v14, %s4156_s6  ;;  %v4565_v14 = vld [vmem:[%s4890_s2 + $0x38] sm:$0xff] }
 0x52e   :  { %1470 = vrot.lane.b32.xlu1 %v1447_v15, %s4156_s6  ;;  %v4577_v15 = vld [vmem:[%s4890_s2 + $0x30] sm:$0xff] }
 0x530   :  { %1496 = vrot.lane.b32.xlu0 %v4307_v8, %s4157_s24  ;;  %v1239_v8 = vadd.f32 %v1229_v20, %v4413_v39  ;;  %v1918_v20 = vld [vmem:[#allocation7 + $0x28] sm:$0xff] }
 0x534   :  { %1494 = vrot.lane.b32.xlu0 %v4320_v10, %s4157_s24  ;;  %v1361_v10 = vadd.f32 %v1351_v26, %v1239_v8 }
 0x538   :  { %1492 = vrot.lane.b32.xlu0 %v4336_v12, %s4157_s24 }
 0x53c   :  { %1490 = vrot.lane.b32.xlu0 %v4343_v13, %s4157_s24  ;;  %v1240_v13 = vadd.f32 %v1231_v24, %v4420_v47 }
 0x53e   :  { %v1362_v36 = vadd.f32 %v1353_v28, %v1240_v13  ;;  %v2113_v13 = vld [vmem:[#allocation7 + $0x48] sm:$0xff] }
 0x598   :  { %v1477_v29 = vpop.permute.xlu1 %1476 }
 0x599   :  { %v1485_v35 = vadd.f32 %v1477_v29, %v1363_v33  ;;  %v1914_v33 = vld [vmem:[#allocation7 + $0x10] sm:$0xff] }
 0x59a   :  { %v1475_v30 = vpop.permute.xlu0 %1474 }
 0x59b   :  { %v1484_v38 = vadd.f32 %v1475_v30, %v1362_v36  ;;  %v2112_v36 = vld [vmem:[#allocation7 + $0x40] sm:$0xff] }
 0x59c   :  { %v1349_v34 = vpop.permute.xlu1 %1348 }
 0x59d   :  { %v1360_v41 = vadd.f32 %v1349_v34, %v1238_v37  ;;  %v1912_v34 = vld [vmem:[#allocation7] sm:$0xff] }
 0x59e   :  { %v1473_v32 = vpop.permute.xlu0 %1472  ;;  %v2227_v37 = vld [vmem:[#allocation8] sm:$0xff] }
 0x59f   :  { %v1483_v12 = vadd.f32 %v1473_v32, %v1361_v10  ;;  %v1915_v32 = vld [vmem:[#allocation7 + $0x18] sm:$0xff] }
 0x5a0   :  { %v1471_v40 = vpop.permute.xlu1 %1470 }
 0x5a1   :  { %4027 = vtanh.f32 %v1483_v12  ;;  %v1482_v39 = vadd.f32 %v1471_v40, %v1360_v41  ;;  %v1913_v12 = vld [vmem:[#allocation7 + $0x8] sm:$0xff]  ;;  %v2442_v40 = vld [vmem:[#allocation8 + $0x58] sm:$0xff]  ;;  %v2441_v41 = vld [vmem:[#allocation8 + $0x50] sm:$0xff] }
 0x5a2   :  { %4029 = vtanh.f32 %v1485_v35  ;;  %v1497_v42 = vpop.permute.xlu0 %1496  ;;  %v2228_v35 = vld [vmem:[#allocation8 + $0x8] sm:$0xff] }
 0x5a3   :  { %4031 = vtanh.f32 %v1484_v38  ;;  %v1505_v52 = vmul.f32 %v4425_v22, %v1497_v42  ;;  %v1506_v22 = vsub.f32 1.0, %v4440_v27  ;;  %v2336_v38 = vld [vmem:[#allocation8 + $0x38] sm:$0xff] }
 0x5a4   :  { %4033 = vtanh.f32 %v1482_v39  ;;  %v2440_v39 = vld [vmem:[#allocation8 + $0x48] sm:$0xff] }
 0x5a6   :  { %v1495_v46 = vpop.permute.xlu0 %1494 }
 0x5a7   :  { %v1504_v59 = vmul.f32 %v4433_v25, %v1495_v46 }
 0x5aa   :  { %v1493_v50 = vpop.permute.xlu0 %1492 }
 0x5ab   :  { %v1503_v60 = vmul.f32 %v4427_v23, %v1493_v50 }
 0x5ae   :  { %v4028_v44 = vpop.eup %4027  ;;  %v1491_v62 = vpop.permute.xlu0 %1490 }
 0x5af   :  { %1516 = vrot.lane.b32.xlu1 %v4028_v44, %s4158_s25  ;;  %v4030_v43 = vpop.eup %4029  ;;  %v1502_v2 = vmul.f32 %v4440_v27, %v1491_v62  ;;  %v2439_v44 = vld [vmem:[#allocation8 + $0x40] sm:$0xff] }
 0x5b0   :  { %v4032_v47 = vpop.eup %4031 }
 0x5b1   :  { %v4034_v45 = vpop.eup %4033 }
 0x5b3   :  { %1520 = vrot.lane.b32.xlu1 %v4030_v43, %s4158_s25 }
 0x5b7   :  { %1518 = vrot.lane.b32.xlu1 %v4032_v47, %s4158_s25 }
 0x5bb   :  { %1514 = vrot.lane.b32.xlu1 %v4034_v45, %s4158_s25 }
 0x621   :  { %v1517_v48 = vpop.permute.xlu1 %1516 }
 0x622   :  { %v1527_v55 = vmul.f32 %v1517_v48, %v1507_v53  ;;  %v2335_v53 = vld [vmem:[#allocation8 + $0x30] sm:$0xff] }
 0x624   :  { %v1531_v63 = vadd.f32 %v1527_v55, %v1503_v60 }
 0x625   :  { %v1521_v51 = vpop.permute.xlu1 %1520 }
 0x626   :  { %v1529_v54 = vmul.f32 %v1521_v51, %v1509_v49 }
 0x628   :  { %v1533_v56 = vadd.f32 %v1529_v54, %v1505_v52 }
 0x629   :  { %v1519_v58 = vpop.permute.xlu1 %1518 }
 0x62a   :  { %v1528_v61 = vmul.f32 %v1519_v58, %v1508_v57  ;;  %1549 = vrot.lane.b32.xlu0 %v1533_v56, %s4158_s25  ;;  %v2334_v57 = vld [vmem:[#allocation8 + $0x28] sm:$0xff] }
 0x62c   :  { %v1532_v0 = vadd.f32 %v1528_v61, %v1504_v59  ;;  %v2333_v61 = vld [vmem:[#allocation8 + $0x20] sm:$0xff] }
 0x62d   :  { %v1515_v1 = vpop.permute.xlu1 %1514 }
 0x62e   :  { %v1526_v3 = vmul.f32 %v1515_v1, %v1506_v22  ;;  %1547 = vrot.lane.b32.xlu1 %v1532_v0, %s4158_s25  ;;  %1545 = vrot.lane.b32.xlu0 %v1531_v63, %s4158_s25 }
 0x630   :  { %v1530_v5 = vadd.f32 %v1526_v3, %v1502_v2 }
 0x632   :  { %1543 = vrot.lane.b32.xlu1 %v1530_v5, %s4158_s25 }
 0x69c   :  { %v4533_v23 = vpop.permute.xlu0 %1549 }
 0x69d   :  { %3166 = vst.msk [vmem:[%s4902_s14 + $0x18] sm:$0xff] %vm115_vm0, %v4533_v23  ;;  %3781 = vmatprep.subr.mxu0 %v4533_v23 }
 0x69e   :  { %3782 = vmatpush3.msra.mxu0 %v4533_v23 }
 0x6a0   :  { %v4542_v25 = vpop.permute.xlu1 %1547  ;;  %v4544_v27 = vpop.permute.xlu0 %1545 }
 0x6a1   :  { %3165 = vst.msk [vmem:[%s4902_s14 + $0x10] sm:$0xff] %vm115_vm0, %v4542_v25  ;;  %3164 = vst.msk [vmem:[%s4902_s14 + $0x8] sm:$0xff] %vm115_vm0, %v4544_v27  ;;  %3783 = vmatprep.subr.mxu0 %v4542_v25 }
 0x6a2   :  { %3784 = vmatpush3.msra.mxu0 %v4542_v25 }
 0x6a3   :  { %3785 = vmatprep.subr.mxu0 %v4544_v27 }
 0x6a4   :  { %v4559_v6 = vpop.permute.xlu1 %1543  ;;  %3786 = vmatpush3.msra.mxu0 %v4544_v27 }
 0x6a5   :  { %3163 = vst.msk [vmem:[%s4902_s14] sm:$0xff] %vm115_vm0, %v4559_v6  ;;  %3787 = vmatprep.subr.mxu0 %v4559_v6 }
 0x6a6   :  { %3788 = vmatpush3.msra.mxu0 %v4559_v6 }
 0x6a7   :  { %3790 = vmatmul.mubr.msk.f32.vlgmr.msra.gmra.mxu0 %vm115_vm0, %v4302_v7  ;;  %3809 = vmatprep.subr.mxu0 %v4565_v14 }
 0x6a8   :  { %3810 = vmatpush3.msra.mxu0 %v4565_v14  ;;  %3792 = vmatprep.mubr.msk.f32.mxu0 %vm115_vm0, %v4313_v9 }
 0x6a9   :  { %3811 = vmatprep.subr.mxu0 %v4577_v15 }
 0x6aa   :  { %3812 = vmatpush3.msra.mxu0 %v4577_v15 }
 0x6ab   :  { %3793 = vmatmul.mubr.msk.f32.gmra.mxu0 %vm115_vm0, %v4331_v11  ;;  %3813 = vmatprep.subr.mxu0 %v4588_v16 }
 0x6ac   :  { %3814 = vmatpush3.msra.mxu0 %v4588_v16  ;;  %3817 = vmatprep.mubr.msk.f32.mxu0 %vm115_vm0, %v4275_v4 }
 0x6ad   :  { %3815 = vmatprep.subr.mxu0 %v4595_v17 }
 0x6ae   :  { %3816 = vmatpush3.msra.mxu0 %v4595_v17 }
 0x6af   :  { %3818 = vmatmul.mubr.msk.f32.vlgmr.msra.gmra.mxu0 %vm115_vm0, %v4302_v7  ;;  %3837 = vmatprep.subr.mxu0 %v1920_v18 }
 0x6b0   :  { %3820 = vmatprep.mubr.msk.f32.mxu0 %vm115_vm0, %v4313_v9  ;;  %3838 = vmatpush3.msra.mxu0 %v1920_v18 }
 0x6b1   :  { %3839 = vmatprep.subr.mxu0 %v1919_v19 }
 0x6b2   :  { %3840 = vmatpush3.msra.mxu0 %v1919_v19 }
 0x6b3   :  { %3821 = vmatmul.mubr.msk.f32.gmra.mxu0 %vm115_vm0, %v4331_v11  ;;  %3841 = vmatprep.subr.mxu0 %v1918_v20 }
 0x6b4   :  { %3842 = vmatpush3.msra.mxu0 %v1918_v20 }
 0x6b5   :  { %3843 = vmatprep.subr.mxu0 %v1917_v21 }
 0x6b6   :  { %3844 = vmatpush3.msra.mxu0 %v1917_v21 }
 0x767   :  { %v3791_v24 = vpop.f32.mrf.mxu0 }
 0x769   :  { %v1621_v26 = vpop.f32.mrf.mxu0 }
 0x76a   :  { %3845 = vmatprep.mubr.msk.f32.mxu0 %vm115_vm0, %v1621_v26 }
 0x76b   :  { %v3794_v28 = vpop.f32.mrf.mxu0  ;;  %3846 = vmatmul.mubr.msk.f32.vlgmr.msra.gmra.mxu0 %vm115_vm0, %v3791_v24 }
 0x76c   :  { %3795 = vmatprep.subr.mxu1 %v3794_v28 }
 0x76d   :  { %v1631_v29 = vpop.f32.mrf.mxu0  ;;  %3796 = vmatpush3.msra.mxu1 %v3794_v28 }
 0x76e   :  { %3797 = vmatprep.subr.mxu1 %v1631_v29  ;;  %3848 = vmatprep.mubr.msk.f32.mxu0 %vm115_vm0, %v1631_v29 }
 0x76f   :  { %3798 = vmatpush3.msra.mxu1 %v1631_v29  ;;  %v4614_v30 = vpop.f32.mrf.mxu0  ;;  %3849 = vmatmul.mubr.msk.f32.gmra.mxu0 %vm115_vm0, %v3794_v28 }
 0x770   :  { %3799 = vmatprep.subr.mxu1 %v3791_v24 }
 0x771   :  { %3800 = vmatpush3.msra.mxu1 %v3791_v24  ;;  %v4617_v8 = vpop.f32.mrf.mxu0 }
 0x772   :  { %3801 = vmatprep.subr.mxu1 %v1621_v26 }
 0x773   :  { %3802 = vmatpush3.msra.mxu1 %v1621_v26  ;;  %v4619_v31 = vpop.f32.mrf.mxu0 }
 0x774   :  { %3804 = vmatmul.mubr.msk.f32.vlgmr.msra.gmra.mxu1 %vm115_vm0, %v4302_v7  ;;  %3823 = vmatprep.subr.mxu1 %v4619_v31 }
 0x775   :  { %v4624_v10 = vpop.f32.mrf.mxu0  ;;  %3824 = vmatpush3.msra.mxu1 %v4619_v31  ;;  %3806 = vmatprep.mubr.msk.f32.mxu1 %vm115_vm0, %v4313_v9 }
 0x776   :  { %3825 = vmatprep.subr.mxu1 %v4624_v10 }
 0x777   :  { %3826 = vmatpush3.msra.mxu1 %v4624_v10 }
 0x778   :  { %3807 = vmatmul.mubr.msk.f32.gmra.mxu1 %vm115_vm0, %v4331_v11  ;;  %3827 = vmatprep.subr.mxu1 %v4614_v30 }
 0x779   :  { %3828 = vmatpush3.msra.mxu1 %v4614_v30  ;;  %3831 = vmatprep.mubr.msk.f32.mxu1 %vm115_vm0, %v4275_v4  ;;  %v2115_v4 = vld [vmem:[#allocation7 + $0x58] sm:$0xff] }
 0x77a   :  { %3829 = vmatprep.subr.mxu1 %v4617_v8  ;;  %3865 = vmatprep.subr.mxu0 %v2115_v4 }
 0x77b   :  { %3830 = vmatpush3.msra.mxu1 %v4617_v8  ;;  %3866 = vmatpush3.msra.mxu0 %v2115_v4 }
 0x77c   :  { %3832 = vmatmul.mubr.msk.f32.vlgmr.msra.gmra.mxu1 %vm115_vm0, %v4302_v7  ;;  %3851 = vmatprep.subr.mxu1 %v1915_v32  ;;  %v2230_v7 = vld [vmem:[#allocation8 + $0x18] sm:$0xff] }
 0x77d   :  { %3852 = vmatpush3.msra.mxu1 %v1915_v32  ;;  %3834 = vmatprep.mubr.msk.f32.mxu1 %vm115_vm0, %v4313_v9  ;;  %v2114_v9 = vld [vmem:[#allocation7 + $0x50] sm:$0xff] }
 0x77e   :  { %3853 = vmatprep.subr.mxu1 %v1914_v33  ;;  %3867 = vmatprep.subr.mxu0 %v2114_v9 }
 0x77f   :  { %3854 = vmatpush3.msra.mxu1 %v1914_v33  ;;  %3868 = vmatpush3.msra.mxu0 %v2114_v9 }
 0x780   :  { %3835 = vmatmul.mubr.msk.f32.gmra.mxu1 %vm115_vm0, %v4331_v11  ;;  %3855 = vmatprep.subr.mxu1 %v1913_v12  ;;  %v2229_v11 = vld [vmem:[#allocation8 + $0x10] sm:$0xff] }
 0x781   :  { %3856 = vmatpush3.msra.mxu1 %v1913_v12  ;;  %3859 = vmatprep.mubr.msk.f32.mxu1 %vm115_vm0, %v4559_v6 }
 0x782   :  { %3857 = vmatprep.subr.mxu1 %v1912_v34  ;;  %3869 = vmatprep.subr.mxu0 %v2113_v13 }
 0x783   :  { %3858 = vmatpush3.msra.mxu1 %v1912_v34  ;;  %3870 = vmatpush3.msra.mxu0 %v2113_v13 }
 0x784   :  { %3860 = vmatmul.mubr.msk.f32.vlgmr.msra.gmra.mxu1 %vm115_vm0, %v4544_v27  ;;  %3879 = vmatprep.subr.mxu1 %v2230_v7 }
 0x785   :  { %3862 = vmatprep.mubr.msk.f32.mxu1 %vm115_vm0, %v4542_v25  ;;  %3880 = vmatpush3.msra.mxu1 %v2230_v7 }
 0x786   :  { %3881 = vmatprep.subr.mxu1 %v2229_v11  ;;  %3871 = vmatprep.subr.mxu0 %v2112_v36 }
 0x787   :  { %3882 = vmatpush3.msra.mxu1 %v2229_v11  ;;  %3872 = vmatpush3.msra.mxu0 %v2112_v36 }
 0x788   :  { %3863 = vmatmul.mubr.msk.f32.gmra.mxu1 %vm115_vm0, %v4533_v23  ;;  %3883 = vmatprep.subr.mxu1 %v2228_v35 }
 0x789   :  { %3887 = vmatprep.mubr.msk.f32.mxu1 %vm115_vm0, %v4595_v17  ;;  %3884 = vmatpush3.msra.mxu1 %v2228_v35 }
 0x78a   :  { %3885 = vmatprep.subr.mxu1 %v2227_v37  ;;  %3893 = vmatprep.subr.mxu0 %v2336_v38 }
 0x78b   :  { %3886 = vmatpush3.msra.mxu1 %v2227_v37 }
 0x78c   :  { %3888 = vmatmul.mubr.msk.f32.vlgmr.msra.gmra.mxu1 %vm115_vm0, %v4588_v16  ;;  %3907 = vmatprep.subr.mxu1 %v2442_v40 }
 0x78d   :  { %3890 = vmatprep.mubr.msk.f32.mxu1 %vm115_vm0, %v4577_v15  ;;  %3908 = vmatpush3.msra.mxu1 %v2442_v40 }
 0x78e   :  { %3909 = vmatprep.subr.mxu1 %v2441_v41 }
 0x78f   :  { %3910 = vmatpush3.msra.mxu1 %v2441_v41 }
 0x790   :  { %3891 = vmatmul.mubr.msk.f32.gmra.mxu1 %vm115_vm0, %v4565_v14  ;;  %3911 = vmatprep.subr.mxu1 %v2440_v39 }
 0x791   :  { %3912 = vmatpush3.msra.mxu1 %v2440_v39 }
 0x792   :  { %3913 = vmatprep.subr.mxu1 %v2439_v44 }
 0x793   :  { %3914 = vmatpush3.msra.mxu1 %v2439_v44 }
 0x834   :  { %v3805_v43 = vpop.f32.mrf.mxu1 }
 0x835   :  { %v1726_v47 = vmul.f32 2.0, %v3805_v43 }
 0x836   :  { %v1706_v45 = vpop.f32.mrf.mxu1 }
 0x837   :  { %v1725_v42 = vmul.f32 2.0, %v1706_v45  ;;  %v1730_v49 = vsub.f32 %v1726_v47, %v4544_v27 }
 0x838   :  { %v3808_v46 = vpop.f32.mrf.mxu1 }
 0x839   :  { %v1729_v48 = vsub.f32 %v1725_v42, %v4559_v6  ;;  %v1728_v50 = vmul.f32 2.0, %v3808_v46  ;;  %v3847_v6 = vpop.f32.mrf.mxu0 }
 0x83a   :  { %v1716_v51 = vpop.f32.mrf.mxu1 }
 0x83b   :  { %v1727_v52 = vmul.f32 2.0, %v1716_v51  ;;  %3873 = vmatprep.mubr.msk.f32.mxu0 %vm115_vm0, %v1729_v48  ;;  %v1732_v58 = vsub.f32 %v1728_v50, %v4533_v23  ;;  %v4059_v23 = vld [vmem:[%s4888_s0] sm:$0xff]  ;;  %v1999_v19 = vpop.f32.mrf.mxu0 }
 0x83c   :  { %v3833_v54 = vpop.f32.mrf.mxu1  ;;  %3874 = vmatmul.mubr.msk.f32.vlgmr.msra.gmra.mxu0 %vm115_vm0, %v1730_v49 }
 0x83d   :  { %v1731_v55 = vsub.f32 %v1727_v52, %v4542_v25  ;;  %v1904_v56 = vmul.f32 2.0, %v3833_v54  ;;  %3894 = vmatpush3.msra.mxu0 %v2336_v38  ;;  %v3850_v24 = vpop.f32.mrf.mxu0 }
 0x83e   :  { %v1884_v59 = vpop.f32.mrf.mxu1  ;;  %3895 = vmatprep.subr.mxu0 %v2335_v53 }
 0x83f   :  { %v1903_v60 = vmul.f32 2.0, %v1884_v59  ;;  %3876 = vmatprep.mubr.msk.f32.mxu0 %vm115_vm0, %v1731_v55  ;;  %3896 = vmatpush3.msra.mxu0 %v2335_v53  ;;  %v1908_v62 = vsub.f32 %v1904_v56, %v4588_v16  ;;  %v2009_v28 = vpop.f32.mrf.mxu0 }
 0x840   :  { %v3836_v63 = vpop.f32.mrf.mxu1  ;;  %3877 = vmatmul.mubr.msk.f32.gmra.mxu0 %vm115_vm0, %v1732_v58  ;;  %3897 = vmatprep.subr.mxu0 %v2334_v57 }
 0x841   :  { %v1907_v0 = vsub.f32 %v1903_v60, %v4595_v17  ;;  %v1906_v22 = vmul.f32 2.0, %v3836_v63  ;;  %3898 = vmatpush3.msra.mxu0 %v2334_v57  ;;  %3901 = vmatprep.mubr.msk.f32.mxu0 %vm115_vm0, %v4617_v8  ;;  %v3346_v8 = vld [vmem:[%s4898_s10] ss:$0 sm:$0xff] }
 0x842   :  { %v1894_v1 = vpop.f32.mrf.mxu1  ;;  %3899 = vmatprep.subr.mxu0 %v2333_v61 }
 0x843   :  { %v1905_v2 = vmul.f32 2.0, %v1894_v1  ;;  %3900 = vmatpush3.msra.mxu0 %v2333_v61  ;;  %3915 = vmatprep.mubr.msk.f32.mxu1 %vm115_vm0, %v1907_v0  ;;  %v1910_v3 = vsub.f32 %v1906_v22, %v4565_v14 }
 0x844   :  { %3902 = vmatmul.mubr.msk.f32.vlgmr.msra.gmra.mxu0 %vm115_vm0, %v4614_v30  ;;  %3916 = vmatmul.mubr.msk.f32.vlgmr.msra.gmra.mxu1 %vm115_vm0, %v1908_v62  ;;  %v3861_v25 = vpop.f32.mrf.mxu1 }
 0x845   :  { %v1909_v5 = vsub.f32 %v1905_v2, %v4577_v15  ;;  %3904 = vmatprep.mubr.msk.f32.mxu0 %vm115_vm0, %v4624_v10  ;;  %v2098_v29 = vadd.f32 %v3861_v25, %v3847_v6 }
 0x846   :  { %v2092_v27 = vpop.f32.mrf.mxu1 }
 0x847   :  { %3918 = vmatprep.mubr.msk.f32.mxu1 %vm115_vm0, %v1909_v5  ;;  %v2093_v10 = vadd.f32 %v2092_v27, %v1999_v19 }
 0x848   :  { %3905 = vmatmul.mubr.msk.f32.gmra.mxu0 %vm115_vm0, %v4619_v31  ;;  %3919 = vmatmul.mubr.msk.f32.gmra.mxu1 %vm115_vm0, %v1910_v3  ;;  %v3864_v18 = vpop.f32.mrf.mxu1 }
 0x849   :  { %3929 = vmatprep.mubr.msk.f32.mxu0 %vm115_vm0, %v4059_v23  ;;  %3943 = vmatprep.mubr.msk.f32.mxu1 %vm115_vm0, %v4059_v23  ;;  %v2108_v12 = vadd.f32 %v3864_v18, %v3850_v24 }
 0x84a   :  { %v2102_v20 = vpop.f32.mrf.mxu1 }
 0x84b   :  { %v2103_v11 = vadd.f32 %v2102_v20, %v2009_v28  ;;  %v2753_v28 = vld [vmem:[%s4897_s9 + $0x18] sm:$0xff] }
 0x84c   :  { %v3889_v21 = vpop.f32.mrf.mxu1 }
 0x84e   :  { %v2309_v26 = vpop.f32.mrf.mxu1 }
 0x850   :  { %v3892_v31 = vpop.f32.mrf.mxu1 }
 0x852   :  { %v2319_v9 = vpop.f32.mrf.mxu1 }
 0x8fc   :  { %v3875_v30 = vpop.f32.mrf.mxu0 }
 0x8fd   :  { %v2214_v32 = vadd.f32 %v3875_v30, %v2098_v29  ;;  %v2752_v29 = vld [vmem:[%s4897_s9 + $0x10] sm:$0xff]  ;;  %v4060_v30 = vld [vmem:[%s4888_s0 + $0x8] sm:$0xff] }
 0x8fe   :  { %v2194_v33 = vpop.f32.mrf.mxu0 }
 0x8ff   :  { %v4693_v34 = vadd.f32 %v3346_v8, %v2214_v32  ;;  %v2213_v4 = vadd.f32 %v2194_v33, %v2093_v10  ;;  %v2750_v10 = vld [vmem:[%s4897_s9] sm:$0xff]  ;;  %v4062_v32 = vld [vmem:[%s4888_s0 + $0x18] sm:$0xff] }
 0x900   :  { %v3878_v7 = vpop.f32.mrf.mxu0 }
 0x901   :  { %v4695_v13 = vadd.f32 %v3346_v8, %v2213_v4  ;;  %v2216_v35 = vadd.f32 %v3878_v7, %v2108_v12  ;;  %v2329_v37 = vadd.f32 %v3889_v21, %v4693_v34 }
 0x902   :  { %v2204_v36 = vpop.f32.mrf.mxu0 }
 0x903   :  { %v4698_v38 = vadd.f32 %v3346_v8, %v2216_v35  ;;  %v2215_v40 = vadd.f32 %v2204_v36, %v2103_v11  ;;  %v2328_v44 = vadd.f32 %v2309_v26, %v4695_v13  ;;  %v3378_v35 = vld [vmem:[%s4897_s9 + $0x38] sm:$0xff] }
 0x904   :  { %v3903_v41 = vpop.f32.mrf.mxu0  ;;  %v3917_v39 = vpop.f32.mrf.mxu1 }
 0x905   :  { %v4701_v43 = vadd.f32 %v3346_v8, %v2215_v40  ;;  %v2435_v47 = vadd.f32 %v3903_v41, %v2329_v37  ;;  %v2331_v46 = vadd.f32 %v3892_v31, %v4698_v38  ;;  %v4061_v8 = vld [vmem:[%s4888_s0 + $0x10] sm:$0xff]  ;;  %v2751_v31 = vld [vmem:[%s4897_s9 + $0x8] sm:$0xff] }
 0x906   :  { %v2415_v45 = vpop.f32.mrf.mxu0  ;;  %v2521_v42 = vpop.f32.mrf.mxu1  ;;  %v3377_v37 = vld [vmem:[%s4897_s9 + $0x30] sm:$0xff]  ;;  %v3376_v41 = vld [vmem:[%s4897_s9 + $0x28] sm:$0xff] }
 0x907   :  { %v2541_v48 = vadd.f32 %v3917_v39, %v2435_v47  ;;  %v2434_v49 = vadd.f32 %v2415_v45, %v2328_v44  ;;  %v2330_v52 = vadd.f32 %v2319_v9, %v4701_v43  ;;  %v3375_v39 = vld [vmem:[%s4897_s9 + $0x20] sm:$0xff]  ;;  %v3386_v44 = vld [vmem:[%s4897_s9 + $0x58] sm:$0xff]  ;;  %v3385_v47 = vld [vmem:[%s4897_s9 + $0x50] sm:$0xff] }
 0x908   :  { %v3906_v50 = vpop.f32.mrf.mxu0  ;;  %v3920_v51 = vpop.f32.mrf.mxu1  ;;  %v3384_v45 = vld [vmem:[%s4897_s9 + $0x48] sm:$0xff] }
 0x909   :  { %v3360_v53 = vmul.f32 -1.442695, %v2541_v48  ;;  %v2540_v54 = vadd.f32 %v2521_v42, %v2434_v49  ;;  %v2437_v55 = vadd.f32 %v3906_v50, %v2331_v46  ;;  %v3383_v42 = vld [vmem:[%s4897_s9 + $0x40] sm:$0xff] }
 0x90a   :  { %v2425_v56 = vpop.f32.mrf.mxu0  ;;  %v2531_v60 = vpop.f32.mrf.mxu1 }
 0x90b   :  { %v3359_v57 = vmul.f32 -1.442695, %v2540_v54  ;;  %v2543_v58 = vadd.f32 %v3920_v51, %v2437_v55  ;;  %v2436_v59 = vadd.f32 %v2425_v56, %v2330_v52  ;;  %4035 = vpow2.f32 %v3360_v53 }
 0x90d   :  { %v3362_v61 = vmul.f32 -1.442695, %v2543_v58  ;;  %v2542_v62 = vadd.f32 %v2531_v60, %v2436_v59  ;;  %4037 = vpow2.f32 %v3359_v57 }
 0x90f   :  { %4039 = vpow2.f32 %v3362_v61  ;;  %v3361_v63 = vmul.f32 -1.442695, %v2542_v62 }
 0x911   :  { %4041 = vpow2.f32 %v3361_v63 }
 0x918   :  { %v4036_v0 = vpop.eup %4035 }
 0x919   :  { %v2557_v2 = vadd.f32 1.0, %v4036_v0 }
 0x91a   :  { %v4038_v22 = vpop.eup %4037 }
 0x91b   :  { %v2556_v23 = vadd.f32 1.0, %v4038_v22 }
 0x91c   :  { %v4040_v1 = vpop.eup %4039 }
 0x91d   :  { %v2559_v3 = vadd.f32 1.0, %v4040_v1 }
 0x91e   :  { %v4042_v5 = vpop.eup %4041 }
 0x91f   :  { %4043 = vrcp.f32 %v2559_v3  ;;  %v2558_v25 = vadd.f32 1.0, %v4042_v5 }
 0x920   :  { %4045 = vrcp.f32 %v2557_v2 }
 0x921   :  { %4047 = vrcp.f32 %v2558_v25 }
 0x922   :  { %4049 = vrcp.f32 %v2556_v23 }
 0x92c   :  { %v4705_v27 = vpop.eup %4043 }
 0x92d   :  { %v4707_v6 = vpop.eup %4045  ;;  %v4711_v18 = vmul.f32 %v4705_v27, %v4565_v14 }
 0x92e   :  { %v4713_v19 = vpop.eup %4047  ;;  %v4726_v24 = vmul.f32 %v4707_v6, %v4588_v16 }
 0x92f   :  { %3921 = vmatprep.subr.mxu0 %v4711_v18  ;;  %v4718_v20 = vmul.f32 %v4713_v19, %v4577_v15  ;;  %v4720_v21 = vpop.eup %4049 }
 0x930   :  { %3922 = vmatpush3.msra.mxu0 %v4711_v18  ;;  %v4732_v26 = vmul.f32 %v4720_v21, %v4595_v17 }
 0x931   :  { %3923 = vmatprep.subr.mxu0 %v4718_v20 }
 0x932   :  { %3924 = vmatpush3.msra.mxu0 %v4718_v20 }
 0x933   :  { %3925 = vmatprep.subr.mxu0 %v4726_v24 }
 0x934   :  { %3926 = vmatpush3.msra.mxu0 %v4726_v24 }
 0x935   :  { %3927 = vmatprep.subr.mxu0 %v4732_v26 }
 0x936   :  { %3928 = vmatpush3.msra.mxu0 %v4732_v26 }
 0x937   :  { %3930 = vmatmul.mubr.msk.f32.vlgmr.msra.gmra.mxu0 %vm115_vm0, %v4060_v30  ;;  %3949 = vmatprep.subr.mxu0 %v2753_v28 }
 0x938   :  { %3950 = vmatpush3.msra.mxu0 %v2753_v28  ;;  %3932 = vmatprep.mubr.msk.f32.mxu0 %vm115_vm0, %v4061_v8 }
 0x939   :  { %3951 = vmatprep.subr.mxu0 %v2752_v29 }
 0x93a   :  { %3952 = vmatpush3.msra.mxu0 %v2752_v29 }
 0x93b   :  { %3933 = vmatmul.mubr.msk.f32.gmra.mxu0 %vm115_vm0, %v4062_v32  ;;  %3953 = vmatprep.subr.mxu0 %v2751_v31 }
 0x93c   :  { %3954 = vmatpush3.msra.mxu0 %v2751_v31  ;;  %3957 = vmatprep.mubr.msk.f32.mxu0 %vm115_vm0, %v4732_v26 }
 0x93d   :  { %3955 = vmatprep.subr.mxu0 %v2750_v10 }
 0x93e   :  { %3956 = vmatpush3.msra.mxu0 %v2750_v10 }
 0x93f   :  { %3958 = vmatmul.mubr.msk.f32.vlgmr.msra.gmra.mxu0 %vm115_vm0, %v4726_v24  ;;  %3977 = vmatprep.subr.mxu0 %v3386_v44 }
 0x940   :  { %3960 = vmatprep.mubr.msk.f32.mxu0 %vm115_vm0, %v4718_v20  ;;  %3978 = vmatpush3.msra.mxu0 %v3386_v44 }
 0x941   :  { %3979 = vmatprep.subr.mxu0 %v3385_v47 }
 0x942   :  { %3980 = vmatpush3.msra.mxu0 %v3385_v47 }
 0x943   :  { %3961 = vmatmul.mubr.msk.f32.gmra.mxu0 %vm115_vm0, %v4711_v18  ;;  %3981 = vmatprep.subr.mxu0 %v3384_v45 }
 0x944   :  { %3982 = vmatpush3.msra.mxu0 %v3384_v45 }
 0x945   :  { %3983 = vmatprep.subr.mxu0 %v3383_v42 }
 0x946   :  { %3984 = vmatpush3.msra.mxu0 %v3383_v42 }
 0x9f7   :  { %v3931_v33 = vpop.f32.mrf.mxu0 }
 0x9f9   :  { %v2638_v12 = vpop.f32.mrf.mxu0 }
 0x9fb   :  { %v3934_v4 = vpop.f32.mrf.mxu0 }
 0x9fc   :  { %3935 = vmatprep.subr.mxu1 %v3934_v4 }
 0x9fd   :  { %v2648_v7 = vpop.f32.mrf.mxu0  ;;  %3936 = vmatpush3.msra.mxu1 %v3934_v4 }
 0x9fe   :  { %3937 = vmatprep.subr.mxu1 %v2648_v7 }
 0x9ff   :  { %3938 = vmatpush3.msra.mxu1 %v2648_v7  ;;  %v3959_v9 = vpop.f32.mrf.mxu0 }
 0xa00   :  { %2857 = vrot.lane.b32.xlu1 %v3959_v9, %s4156_s6  ;;  %3939 = vmatprep.subr.mxu1 %v3931_v33 }
 0xa01   :  { %3940 = vmatpush3.msra.mxu1 %v3931_v33  ;;  %v2832_v11 = vpop.f32.mrf.mxu0 }
 0xa02   :  { %2855 = vrot.lane.b32.xlu0 %v2832_v11, %s4156_s6  ;;  %3941 = vmatprep.subr.mxu1 %v2638_v12 }
 0xa03   :  { %3942 = vmatpush3.msra.mxu1 %v2638_v12  ;;  %v3962_v36 = vpop.f32.mrf.mxu0 }
 0xa04   :  { %2861 = vrot.lane.b32.xlu1 %v3962_v36, %s4156_s6  ;;  %3944 = vmatmul.mubr.msk.f32.vlgmr.msra.gmra.mxu1 %vm115_vm0, %v4060_v30 }
 0xa05   :  { %3963 = vmatprep.subr.mxu1 %v3378_v35  ;;  %v2842_v40 = vpop.f32.mrf.mxu0  ;;  %3946 = vmatprep.mubr.msk.f32.mxu1 %vm115_vm0, %v4061_v8 }
 0xa06   :  { %3964 = vmatpush3.msra.mxu1 %v3378_v35  ;;  %2859 = vrot.lane.b32.xlu0 %v2842_v40, %s4156_s6 }
 0xa07   :  { %3965 = vmatprep.subr.mxu1 %v3377_v37 }
 0xa08   :  { %3966 = vmatpush3.msra.mxu1 %v3377_v37 }
 0xa09   :  { %3947 = vmatmul.mubr.msk.f32.gmra.mxu1 %vm115_vm0, %v4062_v32  ;;  %3967 = vmatprep.subr.mxu1 %v3376_v41 }
 0xa0a   :  { %3968 = vmatpush3.msra.mxu1 %v3376_v41  ;;  %3971 = vmatprep.mubr.msk.f32.mxu1 %vm115_vm0, %v2638_v12 }
 0xa0b   :  { %3969 = vmatprep.subr.mxu1 %v3375_v39 }
 0xa0c   :  { %3970 = vmatpush3.msra.mxu1 %v3375_v39  ;;  %v3136_v39 = vsub.f32 1.0, %v4707_v6 }
 0xa0d   :  { %3972 = vmatmul.mubr.msk.f32.vlgmr.msra.gmra.mxu1 %vm115_vm0, %v3931_v33  ;;  %3991 = vmatprep.subr.mxu1 %v3386_v44 }
 0xa0e   :  { %3974 = vmatprep.mubr.msk.f32.mxu1 %vm115_vm0, %v2648_v7  ;;  %3995 = vmatpush3.msra.mxu1 %v3386_v44  ;;  %v3135_v44 = vsub.f32 1.0, %v4720_v21 }
 0xa0f   :  { %3992 = vmatprep.subr.mxu1 %v3385_v47 }
 0xa10   :  { %3996 = vmatpush3.msra.mxu1 %v3385_v47 }
 0xa11   :  { %3975 = vmatmul.mubr.msk.f32.gmra.mxu1 %vm115_vm0, %v3934_v4  ;;  %3993 = vmatprep.subr.mxu1 %v3384_v45 }
 0xa12   :  { %3997 = vmatpush3.msra.mxu1 %v3384_v45 }
 0xa13   :  { %3994 = vmatprep.subr.mxu1 %v3383_v42 }
 0xa14   :  { %3998 = vmatpush3.msra.mxu1 %v3383_v42  ;;  %v3137_v42 = vsub.f32 1.0, %v4713_v19 }
 0xa72   :  { %v2858_v2 = vpop.permute.xlu1 %2857 }
 0xa74   :  { %v2856_v3 = vpop.permute.xlu0 %2855 }
 0xa76   :  { %v2862_v5 = vpop.permute.xlu1 %2861 }
 0xa78   :  { %v2860_v23 = vpop.permute.xlu0 %2859 }
 0xa79   :  { %v2869_v31 = vadd.f32 %v2860_v23, %v4701_v43  ;;  %v3395_v43 = vld [vmem:[%s4899_s11] ss:$0 sm:$0xff] }
 0xac4   :  { %v3945_v46 = vpop.f32.mrf.mxu1 }
 0xac5   :  { %v2743_v48 = vmul.f32 2.0, %v3945_v46 }
 0xac6   :  { %v2723_v49 = vpop.f32.mrf.mxu1 }
 0xac7   :  { %v2742_v50 = vmul.f32 2.0, %v2723_v49  ;;  %v2747_v53 = vsub.f32 %v2743_v48, %v4726_v24  ;;  %v2868_v24 = vadd.f32 %v2858_v2, %v4693_v34 }
 0xac9   :  { %v2746_v51 = vsub.f32 %v2742_v50, %v4732_v26  ;;  %v3948_v52 = vpop.f32.mrf.mxu1 }
 0xaca   :  { %v2745_v54 = vmul.f32 2.0, %v3948_v52 }
 0xacb   :  { %v2733_v55 = vpop.f32.mrf.mxu1  ;;  %3985 = vmatprep.mubr.msk.f32.mxu0 %vm115_vm0, %v2746_v51  ;;  %v3138_v51 = vsub.f32 1.0, %v4705_v27 }
 0xacc   :  { %v2744_v56 = vmul.f32 2.0, %v2733_v55  ;;  %3986 = vmatmul.mubr.msk.f32.vlgmr.msra.gmra.mxu0 %vm115_vm0, %v2747_v53  ;;  %v2749_v59 = vsub.f32 %v2745_v54, %v4711_v18 }
 0xacd   :  { %v3973_v57 = vpop.f32.mrf.mxu1 }
 0xace   :  { %v2748_v58 = vsub.f32 %v2744_v56, %v4718_v20  ;;  %2979 = vrot.lane.b32.xlu1 %v3973_v57, %s4156_s6 }
 0xacf   :  { %v2954_v60 = vpop.f32.mrf.mxu1 }
 0xad0   :  { %2977 = vrot.lane.b32.xlu0 %v2954_v60, %s4156_s6  ;;  %3988 = vmatprep.mubr.msk.f32.mxu1 %vm115_vm0, %v2748_v58 }
 0xad1   :  { %v3976_v61 = vpop.f32.mrf.mxu1  ;;  %3989 = vmatmul.mubr.msk.f32.vlgmr.msra.gmra.mxu1 %vm115_vm0, %v2749_v59 }
 0xad2   :  { %2983 = vrot.lane.b32.xlu1 %v3976_v61, %s4156_s6 }
 0xad3   :  { %v2964_v62 = vpop.f32.mrf.mxu1 }
 0xad4   :  { %2981 = vrot.lane.b32.xlu0 %v2964_v62, %s4156_s6 }
 0xb40   :  { %v2980_v25 = vpop.permute.xlu1 %2979 }
 0xb41   :  { %v2990_v28 = vadd.f32 %v2980_v25, %v2868_v24  ;;  %v3396_v25 = vld [vmem:[#allocation2] ss:$0 sm:$0xff] }
 0xb42   :  { %v2978_v18 = vpop.permute.xlu0 %2977 }
 0xb44   :  { %v2984_v20 = vpop.permute.xlu1 %2983 }
 0xb46   :  { %v2982_v26 = vpop.permute.xlu0 %2981 }
 0xb47   :  { %v2991_v33 = vadd.f32 %v2982_v26, %v2869_v31 }
 0xb8c   :  { %v3987_v63 = vpop.f32.mrf.mxu0 }
 0xb8d   :  { %3101 = vrot.lane.b32.xlu1 %v3987_v63, %s4156_s6 }
 0xb8e   :  { %v3076_v0 = vpop.f32.mrf.mxu0 }
 0xb8f   :  { %3099 = vrot.lane.b32.xlu0 %v3076_v0, %s4156_s6 }
 0xb91   :  { %v3990_v22 = vpop.f32.mrf.mxu1 }
 0xb92   :  { %3105 = vrot.lane.b32.xlu1 %v3990_v22, %s4156_s6 }
 0xb93   :  { %v3086_v1 = vpop.f32.mrf.mxu1 }
 0xb94   :  { %3103 = vrot.lane.b32.xlu0 %v3086_v1, %s4156_s6 }
 0xb96   :  { %3121 = vrot.lane.b32.xlu1 %v4588_v16, %s4157_s24  ;;  %v2867_v16 = vadd.f32 %v2856_v3, %v4695_v13 }
 0xb98   :  { %3119 = vrot.lane.b32.xlu0 %v4595_v17, %s4157_s24  ;;  %v2989_v29 = vadd.f32 %v2978_v18, %v2867_v16 }
 0xb9a   :  { %3125 = vrot.lane.b32.xlu1 %v4565_v14, %s4157_s24  ;;  %v2870_v14 = vadd.f32 %v2862_v5, %v4698_v38 }
 0xb9c   :  { %3123 = vrot.lane.b32.xlu0 %v4577_v15, %s4157_s24  ;;  %v2992_v10 = vadd.f32 %v2984_v20, %v2870_v14 }
 0xbff   :  { %v3102_v17 = vpop.permute.xlu1 %3101 }
 0xc00   :  { %v3112_v30 = vadd.f32 %v3102_v17, %v2990_v28 }
 0xc01   :  { %v3100_v8 = vpop.permute.xlu0 %3099 }
 0xc02   :  { %4051 = vtanh.f32 %v3112_v30  ;;  %v3111_v15 = vadd.f32 %v3100_v8, %v2989_v29 }
 0xc04   :  { %4053 = vtanh.f32 %v3111_v15  ;;  %v3106_v32 = vpop.permute.xlu1 %3105 }
 0xc05   :  { %v3114_v12 = vadd.f32 %v3106_v32, %v2992_v10 }
 0xc06   :  { %v3104_v34 = vpop.permute.xlu0 %3103 }
 0xc07   :  { %4055 = vtanh.f32 %v3114_v12  ;;  %v3113_v4 = vadd.f32 %v3104_v34, %v2991_v33 }
 0xc08   :  { %v3122_v11 = vpop.permute.xlu1 %3121 }
 0xc09   :  { %4057 = vtanh.f32 %v3113_v4  ;;  %v3132_v49 = vmul.f32 %v4707_v6, %v3122_v11 }
 0xc0a   :  { %v3120_v35 = vpop.permute.xlu0 %3119 }
 0xc0b   :  { %v3131_v50 = vmul.f32 %v4720_v21, %v3120_v35 }
 0xc0c   :  { %v3126_v36 = vpop.permute.xlu1 %3125 }
 0xc0d   :  { %v3134_v58 = vmul.f32 %v4705_v27, %v3126_v36 }
 0xc0e   :  { %v3124_v37 = vpop.permute.xlu0 %3123 }
 0xc0f   :  { %v4052_v13 = vpop.eup %4051  ;;  %v3133_v53 = vmul.f32 %v4713_v19, %v3124_v37 }
 0xc10   :  { %3145 = vrot.lane.b32.xlu1 %v4052_v13, %s4158_s25 }
 0xc11   :  { %v4054_v7 = vpop.eup %4053 }
 0xc12   :  { %3143 = vrot.lane.b32.xlu0 %v4054_v7, %s4158_s25 }
 0xc14   :  { %v4056_v38 = vpop.eup %4055 }
 0xc15   :  { %3149 = vrot.lane.b32.xlu1 %v4056_v38, %s4158_s25 }
 0xc16   :  { %v4058_v9 = vpop.eup %4057 }
 0xc17   :  { %3147 = vrot.lane.b32.xlu0 %v4058_v9, %s4158_s25 }
 0xc1b   :  { %3194 = vrot.lane.b32.xlu0 %v3395_v43, %s4157_s24 }
 0xc82   :  { %v3146_v40 = vpop.permute.xlu1 %3145 }
 0xc83   :  { %v3156_v47 = vmul.f32 %v3146_v40, %v3136_v39 }
 0xc84   :  { %v3144_v41 = vpop.permute.xlu0 %3143 }
 0xc85   :  { %v3155_v45 = vmul.f32 %v3144_v41, %v3135_v44  ;;  %v3160_v54 = vadd.f32 %v3156_v47, %v3132_v49 }
 0xc87   :  { %v3150_v46 = vpop.permute.xlu1 %3149  ;;  %v3159_v55 = vadd.f32 %v3155_v45, %v3131_v50 }
 0xc88   :  { %v3158_v56 = vmul.f32 %v3150_v46, %v3138_v51 }
 0xc89   :  { %v3148_v48 = vpop.permute.xlu0 %3147 }
 0xc8a   :  { %v3157_v52 = vmul.f32 %v3148_v48, %v3137_v42  ;;  %v3162_v62 = vadd.f32 %v3158_v56, %v3134_v58 }
 0xc8c   :  { %v3161_v59 = vadd.f32 %v3157_v52, %v3133_v53 }
 0xc8d   :  { %v3195_v57 = vpop.permute.xlu0 %3194 }
 0xc8e   :  { %v3198_v60 = vmul.f32 %v3195_v57, %v3160_v54  ;;  %v3197_v61 = vmul.f32 %v3195_v57, %v3159_v55  ;;  %v3200_v6 = vmul.f32 %v3195_v57, %v3162_v62  ;;  %v3199_v21 = vmul.f32 %v3195_v57, %v3161_v59 }
 0xc90   :  { %3207 = vrot.lane.b32.xlu0 %v3198_v60, %s4158_s25  ;;  %3205 = vrot.lane.b32.xlu1 %v3197_v61, %s4158_s25 }
 0xc94   :  { %3211 = vrot.lane.b32.xlu0 %v3200_v6, %s4158_s25  ;;  %3209 = vrot.lane.b32.xlu1 %v3199_v21, %s4158_s25 }
 0xc98   :  { %3171 = vrot.lane.b32.xlu0 %v3159_v55, %s4158_s25  ;;  %3173 = vrot.lane.b32.xlu1 %v3160_v54, %s4158_s25 }
 0xd02   :  { %v3208_v19 = vpop.permute.xlu0 %3207  ;;  %v3206_v27 = vpop.permute.xlu1 %3205 }
 0xd03   :  { %v3220_v63 = vsel %vm115_vm0, %v3208_v19, 0.0  ;;  %v3217_v0 = vsel %vm115_vm0, %v3206_v27, 0.0 }
 0xd04   :  { %3221 = vadd.xlane.f32.xlu0 %v3220_v63  ;;  %3218 = vadd.xlane.f32.xlu1 %v3217_v0 }
 0xd06   :  { %v3212_v22 = vpop.permute.xlu0 %3211  ;;  %v3210_v1 = vpop.permute.xlu1 %3209 }
 0xd07   :  { %v3226_v2 = vsel %vm115_vm0, %v3212_v22, 0.0  ;;  %v3223_v3 = vsel %vm115_vm0, %v3210_v1, 0.0 }
 0xd08   :  { %3227 = vadd.xlane.f32.xlu1 %v3226_v2  ;;  %3224 = vadd.xlane.f32.xlu0 %v3223_v3 }
 0xd0a   :  { %v3172_v5 = vpop.permute.xlu0 %3171  ;;  %v3174_v23 = vpop.permute.xlu1 %3173 }
 0xd0b   :  { %3391 = vst.msk [vmem:[%s4902_s14 + $0x20] sm:$0xff] %vm115_vm0, %v3172_v5  ;;  %3392 = vst.msk [vmem:[%s4902_s14 + $0x28] sm:$0xff] %vm115_vm0, %v3174_v23 }
 0xd19   :  { %3175 = vrot.lane.b32.xlu1 %v3161_v59, %s4158_s25 }
 0xd1e   :  { %3177 = vrot.lane.b32.xlu0 %v3162_v62, %s4158_s25 }
 0xd8d   :  { %v3222_v18 = vpop.xlane.xlu0 %3221  ;;  %v3219_v20 = vpop.xlane.xlu1 %3218 }
 0xd8e   :  { %v3237_v24 = vadd.f32 %v3396_v25, %v3222_v18  ;;  %v3236_v26 = vadd.f32 %v3396_v25, %v3219_v20 }
 0xd90   :  { %3242 = vst.msk [vmem:[%s4901_s13 + $0x8] sm:$0xff] %vm3240_vm1, %v3237_v24  ;;  %3241 = vst.msk [vmem:[%s4901_s13] sm:$0xff] %vm3240_vm1, %v3236_v26 }
 0xd91   :  { %v3225_v16 = vpop.xlane.xlu0 %3224  ;;  %v3228_v28 = vpop.xlane.xlu1 %3227 }
 0xd92   :  { %v3238_v17 = vadd.f32 %v3396_v25, %v3225_v16  ;;  %v3239_v29 = vadd.f32 %v3396_v25, %v3228_v28 }
 0xd94   :  { %3243 = vst.msk [vmem:[%s4901_s13 + $0x10] sm:$0xff] %vm3240_vm1, %v3238_v17  ;;  %3244 = vst.msk [vmem:[%s4901_s13 + $0x18] sm:$0xff] %vm3240_vm1, %v3239_v29 }
 0xd95   :  { %v3178_v30 = vpop.permute.xlu0 %3177  ;;  %v3176_v14 = vpop.permute.xlu1 %3175 }
 0xd96   :  { %3394 = vst.msk [vmem:[%s4902_s14 + $0x38] sm:$0xff] %vm115_vm0, %v3178_v30  ;;  %3393 = vst.msk [vmem:[%s4902_s14 + $0x30] sm:$0xff] %vm115_vm0, %v3176_v14 }
 0xd97   :  { %3253 = vsyncpa [#allocation4], 1 }
 0xd98   :  { %3254 = vsyncpa [#allocation6], 1 }
 0xd99   :  { %3255 = vsyncpa [#allocation9], 1 }

</bundles_post_ra>
